<compile_context>
chip_gen: v7x
topology: tpu7x:2x2x1
jax: 0.10.0
libtpu: 0.0.40
codegen_flags: <defaults>
</compile_context>

<pallas_src>
import functools

import jax
import jax.numpy as jnp
from jax.experimental import pallas as pl
from jax.experimental.pallas import tpu as pltpu


def _round_up(x, m):
    return ((x + m - 1) // m) * m


def _cdiv(a, b):
    return (a + b - 1) // b


def _gs_slot_broadcast_kernel(x_ref, wft_ref, bft_ref, w1_ref, b1_ref,
                              w2_ref, b2_ref, esa_ref, et_ref, out_ref,
                              *, grid_size):
    # x_ref:   [tm, D]
    # wft:     [D, D]      bft: [1, D]
    # w1:      [D, 128]    b1:  [1, 128]
    # w2:      [128, GG]   b2:  [1, GG]
    # esa:     [GG, GG*D]  bf16 0/1 (repeat-each-logit-D-times expansion)
    # et:      [D,  GG*D]  bf16 0/1 (tile-features-GG-times expansion)
    # out_ref: [tm, GG*D]  lane-dense output slab (unmasked full-width stores)
    G = grid_size
    x = x_ref[...].astype(jnp.float32)

    # feature_transform: Linear(D, D)
    t = jnp.dot(x, wft_ref[...], preferred_element_type=jnp.float32) + bft_ref[...]

    # projection_mlp: Linear(D, 128) -> ReLU -> Linear(128, G*G)
    h = jnp.dot(t, w1_ref[...], preferred_element_type=jnp.float32) + b1_ref[...]
    h = jnp.maximum(h, 0.0)
    a = jnp.dot(h, w2_ref[...], preferred_element_type=jnp.float32) + b2_ref[...]

    tm, gg = a.shape
    # Within-group lane position (groups are G consecutive lanes).
    pos = jax.lax.broadcasted_iota(jnp.int32, (tm, gg), 1) % G
    neg = jnp.float32(-1e30)

    def shift_r(v, s):   # result[:, i] = v[:, i - s]   (left-filled; always masked)
        return jnp.concatenate(
            [jnp.full((tm, s), neg, v.dtype), v[:, :gg - s]], axis=1)

    def shift_l(v, s):   # result[:, i] = v[:, i + s]   (right-filled; always masked)
        return jnp.concatenate(
            [v[:, s:], jnp.full((tm, s), neg, v.dtype)], axis=1)

    # --- per-group max (lane-dense, masked prefix/suffix max trees) ---------
    pre = a
    suf = a
    s = 1
    while s < G:
        pre = jnp.maximum(pre, jnp.where(pos >= s, shift_r(pre, s), neg))
        suf = jnp.maximum(suf, jnp.where(pos < G - s, shift_l(suf, s), neg))
        s *= 2
    gmax = jnp.maximum(pre, suf)                 # group max replicated per lane

    e = jnp.exp(a - gmax)                        # [tm, GG], max element -> exp(0)=1

    # --- per-group sums via the same masked trees (exact f32 adds) ----------
    pre_s = e
    suf_s = e
    s = 1
    while s < G:
        pre_s = pre_s + jnp.where(pos >= s, shift_r(pre_s, s), 0.0)
        suf_s = suf_s + jnp.where(pos < G - s, shift_l(suf_s, s), 0.0)
        s *= 2
    gsum = pre_s + suf_s - e                     # each lane holds its group sum >= 1

    sa = e * pl.reciprocal(gsum)                 # exact reciprocal (EUP has slack)

    # --- outer product sa (x) t as a lane-dense [tm, GG*D] slab -------------
    # Replication offloaded to the MXU via bf16 0/1 expansion matrices.
    # hi/lo split: two single-pass bf16 dots per expansion (vs 6-pass HIGHEST);
    # the 0/1 zeros contribute exactly 0, so values keep ~16 mantissa bits.
    def dot01(lhs_f32, rhs_ref):
        rhs = rhs_ref[...]                       # bf16 0/1
        hi = lhs_f32.astype(jnp.bfloat16)
        lo = (lhs_f32 - hi.astype(jnp.float32)).astype(jnp.bfloat16)
        return (jnp.dot(hi, rhs, preferred_element_type=jnp.float32) +
                jnp.dot(lo, rhs, preferred_element_type=jnp.float32))

    sa_rep = dot01(sa, esa_ref)                  # [tm, GG*D]
    t_rep = dot01(t, et_ref)                     # [tm, GG*D]
    out_ref[...] = (sa_rep * t_rep).astype(out_ref.dtype)


def gs_slot_broadcast(slots, params, *, grid_size=8, tm=None,
                      vmem_limit_bytes=None):
    """slots: [B, N, D] -> [B*N, grid_size, grid_size, D]."""
    B, N, D = slots.shape
    M = B * N
    gg = grid_size * grid_size
    feat = gg * D

    x = slots.reshape(M, D)

    # Row tile: default 512 (sweep 512/1024 on v6e); ensure >= 2 grid steps
    # when M allows so v7x's two TensorCores both get work.
    if tm is None:
        tm = 512
        if M > 16 and _cdiv(M, tm) < 2:
            tm = _round_up(_cdiv(M, 2), 8)
    tm = _round_up(max(8, min(tm, _round_up(M, 8))), 8)
    grid_m = _cdiv(M, tm)            # ragged last block handled by Pallas clipping

    if vmem_limit_bytes is None:
        # out tile double-buffer + ~4 full-width f32-equivalent temporaries
        # + constants/headroom; stays within v7x's 64 MiB at tm <= 512.
        vmem_limit_bytes = int(min(100 << 20,
                                   max(32 << 20, 6 * tm * feat * 4 + (6 << 20))))

    wft, bft = params["wft"], params["bft"]        # [D, D], [1, D]
    w1, b1 = params["w1"], params["b1"]            # [D, 128], [1, 128]
    w2, b2 = params["w2"], params["b2"]            # [128, GG], [1, GG]

    # Constant 0/1 expansion matrices (bf16 is exact for 0/1 values).
    idx = jnp.arange(gg, dtype=jnp.int32)
    col = jnp.arange(feat, dtype=jnp.int32)
    drange = jnp.arange(D, dtype=jnp.int32)
    e_sa = (col[None, :] // D == idx[:, None]).astype(jnp.bfloat16)   # [GG, GG*D]
    e_t = (col[None, :] % D == drange[:, None]).astype(jnp.bfloat16)  # [D,  GG*D]

    full = lambda *shape: pl.BlockSpec(shape, lambda i: (0,) * len(shape))
    kernel = functools.partial(_gs_slot_broadcast_kernel, grid_size=grid_size)

    out2d = pl.pallas_call(
        kernel,
        out_shape=jax.ShapeDtypeStruct((M, feat), slots.dtype),
        grid_spec=pltpu.PrefetchScalarGridSpec(
            num_scalar_prefetch=0,
            grid=(grid_m,),
            in_specs=[
                pl.BlockSpec((tm, D), lambda i: (i, 0)),     # x rows
                full(D, D), full(1, D),                      # feature_transform
                full(D, 128), full(1, 128),                  # mlp layer 1
                full(128, gg), full(1, gg),                  # mlp layer 2
                full(gg, feat),                              # sa expansion (bf16)
                full(D, feat),                               # t expansion (bf16)
            ],
            out_specs=pl.BlockSpec((tm, feat), lambda i: (i, 0)),
        ),
        compiler_params=pltpu.CompilerParams(
            dimension_semantics=("parallel",),
            vmem_limit_bytes=vmem_limit_bytes),
    )(x, wft, bft, w1, b1, w2, b2, e_sa, e_t)

    # Free (minor-dim split) reshape to the module's 4-D output layout.
    return out2d.reshape(M, grid_size, grid_size, D)


def _reference(slots, params, grid_size=8):
    B, N, D = slots.shape
    x = slots.reshape(B * N, D)
    t = x @ params["wft"] + params["bft"]
    h = jax.nn.relu(t @ params["w1"] + params["b1"])
    a = h @ params["w2"] + params["b2"]
    sa = jax.nn.softmax(a.reshape(B * N, grid_size, grid_size), axis=-1)
    return sa[:, :, :, None] * t[:, None, None, :]


if __name__ == "__main__":
    B, N, D, G = 2, 4, 32, 8   # batch=2, num_slots=4, slot_size=32, grid_size=8

    key = jax.random.PRNGKey(0)
    k_x, k_wft, k_bft, k_w1, k_b1, k_w2, k_b2 = jax.random.split(key, 7)

    slots = jax.random.normal(k_x, (B, N, D), dtype=jnp.float32)

    # Deterministic synthetic parameters (stored input-major: y = x @ W + b).
    params = {
        "wft": jax.random.normal(k_wft, (D, D), jnp.float32) * 0.1,
        "bft": jax.random.normal(k_bft, (1, D), jnp.float32) * 0.1,
        "w1":  jax.random.normal(k_w1, (D, 128), jnp.float32) * 0.1,
        "b1":  jax.random.normal(k_b1, (1, 128), jnp.float32) * 0.1,
        "w2":  jax.random.normal(k_w2, (128, G * G), jnp.float32) * 0.1,
        "b2":  jax.random.normal(k_b2, (1, G * G), jnp.float32) * 0.1,
    }

    out = gs_slot_broadcast(slots, params, grid_size=G)
    out = jax.block_until_ready(out)

    assert out.shape == (B * N, G, G, D), out.shape

    ref = _reference(slots, params, grid_size=G)
    assert jnp.allclose(out, ref, rtol=1e-4, atol=1e-5), "mismatch vs reference"

    print("KERNEL_OK")
</pallas_src>

<mosaic_0001>
module attributes {stable_mosaic.version = 11 : i64} {
  func.func @_gs_slot_broadcast_kernel(%arg0: i32, %arg1: memref<8x32xf32, #tpu.memory_space<vmem>>, %arg2: memref<32x32xf32, #tpu.memory_space<vmem>>, %arg3: memref<1x32xf32, #tpu.memory_space<vmem>>, %arg4: memref<32x128xf32, #tpu.memory_space<vmem>>, %arg5: memref<1x128xf32, #tpu.memory_space<vmem>>, %arg6: memref<128x64xf32, #tpu.memory_space<vmem>>, %arg7: memref<1x64xf32, #tpu.memory_space<vmem>>, %arg8: memref<64x2048xbf16, #tpu.memory_space<vmem>>, %arg9: memref<32x2048xbf16, #tpu.memory_space<vmem>>, %arg10: memref<8x2048xf32, #tpu.memory_space<vmem>>) attributes {dimension_semantics = [#tpu.dimension_semantics<parallel>], iteration_bounds = array<i64: 1>, scalar_prefetch = 0 : i64, scratch_operands = 0 : i64, tpu.core_type = #tpu.core_type<tc>, window_params = [{transform_indices = @transform_0, window_bounds = array<i64: 8, 32>}, {pipeline_mode = #tpu.pipeline_mode<synchronous>, transform_indices = @transform_1, window_bounds = array<i64: 32, 32>}, {pipeline_mode = #tpu.pipeline_mode<synchronous>, transform_indices = @transform_2, window_bounds = array<i64: 1, 32>}, {pipeline_mode = #tpu.pipeline_mode<synchronous>, transform_indices = @transform_3, window_bounds = array<i64: 32, 128>}, {pipeline_mode = #tpu.pipeline_mode<synchronous>, transform_indices = @transform_4, window_bounds = array<i64: 1, 128>}, {pipeline_mode = #tpu.pipeline_mode<synchronous>, transform_indices = @transform_5, window_bounds = array<i64: 128, 64>}, {pipeline_mode = #tpu.pipeline_mode<synchronous>, transform_indices = @transform_6, window_bounds = array<i64: 1, 64>}, {pipeline_mode = #tpu.pipeline_mode<synchronous>, transform_indices = @transform_7, window_bounds = array<i64: 64, 2048>}, {pipeline_mode = #tpu.pipeline_mode<synchronous>, transform_indices = @transform_8, window_bounds = array<i64: 32, 2048>}, {transform_indices = @transform_9, window_bounds = array<i64: 8, 2048>}]} {
    %c0 = arith.constant 0 : index
    %c0_0 = arith.constant 0 : index
    %0 = vector.load %arg1[%c0, %c0_0] : memref<8x32xf32, #tpu.memory_space<vmem>>, vector<8x32xf32>
    %c0_1 = arith.constant 0 : index
    %c0_2 = arith.constant 0 : index
    %1 = vector.load %arg2[%c0_1, %c0_2] : memref<32x32xf32, #tpu.memory_space<vmem>>, vector<32x32xf32>
    %cst = arith.constant dense<0.000000e+00> : vector<8x32xf32>
    %2 = tpu.matmul %0, %1, %cst {dimension_numbers = #tpu.dot_dimension_numbers<[1], [0], [0], [1], [0, 0, 1, 1], [], []>} : vector<8x32xf32>, vector<32x32xf32>, vector<8x32xf32> -> vector<8x32xf32>
    %c0_3 = arith.constant 0 : index
    %c0_4 = arith.constant 0 : index
    %3 = vector.load %arg3[%c0_3, %c0_4] : memref<1x32xf32, #tpu.memory_space<vmem>>, vector<1x32xf32>
    %4 = vector.broadcast %3 : vector<1x32xf32> to vector<8x32xf32>
    %5 = arith.addf %2, %4 : vector<8x32xf32>
    %c0_5 = arith.constant 0 : index
    %c0_6 = arith.constant 0 : index
    %6 = vector.load %arg4[%c0_5, %c0_6] : memref<32x128xf32, #tpu.memory_space<vmem>>, vector<32x128xf32>
    %cst_7 = arith.constant dense<0.000000e+00> : vector<8x128xf32>
    %7 = tpu.matmul %5, %6, %cst_7 {dimension_numbers = #tpu.dot_dimension_numbers<[1], [0], [0], [1], [0, 0, 1, 1], [], []>} : vector<8x32xf32>, vector<32x128xf32>, vector<8x128xf32> -> vector<8x128xf32>
    %c0_8 = arith.constant 0 : index
    %c0_9 = arith.constant 0 : index
    %8 = vector.load %arg5[%c0_8, %c0_9] : memref<1x128xf32, #tpu.memory_space<vmem>>, vector<1x128xf32>
    %9 = vector.broadcast %8 : vector<1x128xf32> to vector<8x128xf32>
    %10 = arith.addf %7, %9 : vector<8x128xf32>
    %cst_10 = arith.constant 0.000000e+00 : f32
    %11 = vector.broadcast %cst_10 : f32 to vector<8x128xf32>
    %12 = arith.maximumf %10, %11 : vector<8x128xf32>
    %c0_11 = arith.constant 0 : index
    %c0_12 = arith.constant 0 : index
    %13 = vector.load %arg6[%c0_11, %c0_12] : memref<128x64xf32, #tpu.memory_space<vmem>>, vector<128x64xf32>
    %cst_13 = arith.constant dense<0.000000e+00> : vector<8x64xf32>
    %14 = tpu.matmul %12, %13, %cst_13 {dimension_numbers = #tpu.dot_dimension_numbers<[1], [0], [0], [1], [0, 0, 1, 1], [], []>} : vector<8x128xf32>, vector<128x64xf32>, vector<8x64xf32> -> vector<8x64xf32>
    %c0_14 = arith.constant 0 : index
    %c0_15 = arith.constant 0 : index
    %15 = vector.load %arg7[%c0_14, %c0_15] : memref<1x64xf32, #tpu.memory_space<vmem>>, vector<1x64xf32>
    %16 = vector.broadcast %15 : vector<1x64xf32> to vector<8x64xf32>
    %17 = arith.addf %14, %16 : vector<8x64xf32>
    %18 = tpu.iota {dimensions = array<i32: 1>} : vector<8x64xi32>
    %c8_i32 = arith.constant 8 : i32
    %c0_i32 = arith.constant 0 : i32
    %19 = arith.cmpi eq, %c8_i32, %c0_i32 : i32
    %c1_i32 = arith.constant 1 : i32
    %20 = arith.select %19, %c1_i32, %c8_i32 : i32
    %21 = vector.broadcast %20 : i32 to vector<8x64xi32>
    %22 = arith.remsi %18, %21 : vector<8x64xi32>
    %c0_i32_16 = arith.constant 0 : i32
    %23 = vector.broadcast %c0_i32_16 : i32 to vector<8x64xi32>
    %24 = arith.cmpi ne, %22, %23 : vector<8x64xi32>
    %c0_i32_17 = arith.constant 0 : i32
    %25 = vector.broadcast %c0_i32_17 : i32 to vector<8x64xi32>
    %26 = arith.cmpi slt, %22, %25 : vector<8x64xi32>
    %c0_i32_18 = arith.constant 0 : i32
    %27 = arith.cmpi slt, %20, %c0_i32_18 : i32
    %28 = vector.broadcast %27 : i1 to vector<8x64xi1>
    %29 = vector.broadcast %28 : vector<8x64xi1> to vector<8x64xi1>
    %30 = arith.xori %26, %29 : vector<8x64xi1>
    %31 = arith.andi %30, %24 : vector<8x64xi1>
    %32 = vector.broadcast %20 : i32 to vector<8x64xi32>
    %33 = arith.addi %22, %32 : vector<8x64xi32>
    %34 = arith.select %31, %33, %22 : vector<8x64xi1>, vector<8x64xi32>
    %c1_i32_19 = arith.constant 1 : i32
    %35 = vector.broadcast %c1_i32_19 : i32 to vector<8x64xi32>
    %36 = arith.cmpi sge, %34, %35 : vector<8x64xi32>
    %cst_20 = arith.constant -1.000000e+30 : f32
    %37 = vector.broadcast %cst_20 : f32 to vector<8x1xf32>
    %38 = vector.extract_strided_slice %17 {offsets = [0, 0], sizes = [8, 63], strides = [1, 1]} : vector<8x64xf32> to vector<8x63xf32>
    %39 = tpu.concatenate %37, %38 in 1 : vector<8x1xf32>, vector<8x63xf32> -> vector<8x64xf32>
    %cst_21 = arith.constant -1.000000e+30 : f32
    %40 = vector.broadcast %cst_21 : f32 to vector<8x64xf32>
    %41 = arith.select %36, %39, %40 : vector<8x64xi1>, vector<8x64xf32>
    %42 = arith.maximumf %17, %41 : vector<8x64xf32>
    %c7_i32 = arith.constant 7 : i32
    %43 = vector.broadcast %c7_i32 : i32 to vector<8x64xi32>
    %44 = arith.cmpi slt, %34, %43 : vector<8x64xi32>
    %45 = vector.extract_strided_slice %17 {offsets = [0, 1], sizes = [8, 63], strides = [1, 1]} : vector<8x64xf32> to vector<8x63xf32>
    %cst_22 = arith.constant -1.000000e+30 : f32
    %46 = vector.broadcast %cst_22 : f32 to vector<8x1xf32>
    %47 = tpu.concatenate %45, %46 in 1 : vector<8x63xf32>, vector<8x1xf32> -> vector<8x64xf32>
    %cst_23 = arith.constant -1.000000e+30 : f32
    %48 = vector.broadcast %cst_23 : f32 to vector<8x64xf32>
    %49 = arith.select %44, %47, %48 : vector<8x64xi1>, vector<8x64xf32>
    %50 = arith.maximumf %17, %49 : vector<8x64xf32>
    %c2_i32 = arith.constant 2 : i32
    %51 = vector.broadcast %c2_i32 : i32 to vector<8x64xi32>
    %52 = arith.cmpi sge, %34, %51 : vector<8x64xi32>
    %cst_24 = arith.constant -1.000000e+30 : f32
    %53 = vector.broadcast %cst_24 : f32 to vector<8x2xf32>
    %54 = vector.extract_strided_slice %42 {offsets = [0, 0], sizes = [8, 62], strides = [1, 1]} : vector<8x64xf32> to vector<8x62xf32>
    %55 = tpu.concatenate %53, %54 in 1 : vector<8x2xf32>, vector<8x62xf32> -> vector<8x64xf32>
    %cst_25 = arith.constant -1.000000e+30 : f32
    %56 = vector.broadcast %cst_25 : f32 to vector<8x64xf32>
    %57 = arith.select %52, %55, %56 : vector<8x64xi1>, vector<8x64xf32>
    %58 = arith.maximumf %42, %57 : vector<8x64xf32>
    %c6_i32 = arith.constant 6 : i32
    %59 = vector.broadcast %c6_i32 : i32 to vector<8x64xi32>
    %60 = arith.cmpi slt, %34, %59 : vector<8x64xi32>
    %61 = vector.extract_strided_slice %50 {offsets = [0, 2], sizes = [8, 62], strides = [1, 1]} : vector<8x64xf32> to vector<8x62xf32>
    %cst_26 = arith.constant -1.000000e+30 : f32
    %62 = vector.broadcast %cst_26 : f32 to vector<8x2xf32>
    %63 = tpu.concatenate %61, %62 in 1 : vector<8x62xf32>, vector<8x2xf32> -> vector<8x64xf32>
    %cst_27 = arith.constant -1.000000e+30 : f32
    %64 = vector.broadcast %cst_27 : f32 to vector<8x64xf32>
    %65 = arith.select %60, %63, %64 : vector<8x64xi1>, vector<8x64xf32>
    %66 = arith.maximumf %50, %65 : vector<8x64xf32>
    %c4_i32 = arith.constant 4 : i32
    %67 = vector.broadcast %c4_i32 : i32 to vector<8x64xi32>
    %68 = arith.cmpi sge, %34, %67 : vector<8x64xi32>
    %cst_28 = arith.constant -1.000000e+30 : f32
    %69 = vector.broadcast %cst_28 : f32 to vector<8x4xf32>
    %70 = vector.extract_strided_slice %58 {offsets = [0, 0], sizes = [8, 60], strides = [1, 1]} : vector<8x64xf32> to vector<8x60xf32>
    %71 = tpu.concatenate %69, %70 in 1 : vector<8x4xf32>, vector<8x60xf32> -> vector<8x64xf32>
    %cst_29 = arith.constant -1.000000e+30 : f32
    %72 = vector.broadcast %cst_29 : f32 to vector<8x64xf32>
    %73 = arith.select %68, %71, %72 : vector<8x64xi1>, vector<8x64xf32>
    %74 = arith.maximumf %58, %73 : vector<8x64xf32>
    %c4_i32_30 = arith.constant 4 : i32
    %75 = vector.broadcast %c4_i32_30 : i32 to vector<8x64xi32>
    %76 = arith.cmpi slt, %34, %75 : vector<8x64xi32>
    %77 = vector.extract_strided_slice %66 {offsets = [0, 4], sizes = [8, 60], strides = [1, 1]} : vector<8x64xf32> to vector<8x60xf32>
    %cst_31 = arith.constant -1.000000e+30 : f32
    %78 = vector.broadcast %cst_31 : f32 to vector<8x4xf32>
    %79 = tpu.concatenate %77, %78 in 1 : vector<8x60xf32>, vector<8x4xf32> -> vector<8x64xf32>
    %cst_32 = arith.constant -1.000000e+30 : f32
    %80 = vector.broadcast %cst_32 : f32 to vector<8x64xf32>
    %81 = arith.select %76, %79, %80 : vector<8x64xi1>, vector<8x64xf32>
    %82 = arith.maximumf %66, %81 : vector<8x64xf32>
    %83 = arith.maximumf %74, %82 : vector<8x64xf32>
    %84 = arith.subf %17, %83 : vector<8x64xf32>
    %85 = math.exp %84 : vector<8x64xf32>
    %c1_i32_33 = arith.constant 1 : i32
    %86 = vector.broadcast %c1_i32_33 : i32 to vector<8x64xi32>
    %87 = arith.cmpi sge, %34, %86 : vector<8x64xi32>
    %cst_34 = arith.constant -1.000000e+30 : f32
    %88 = vector.broadcast %cst_34 : f32 to vector<8x1xf32>
    %89 = vector.extract_strided_slice %85 {offsets = [0, 0], sizes = [8, 63], strides = [1, 1]} : vector<8x64xf32> to vector<8x63xf32>
    %90 = tpu.concatenate %88, %89 in 1 : vector<8x1xf32>, vector<8x63xf32> -> vector<8x64xf32>
    %cst_35 = arith.constant 0.000000e+00 : f32
    %91 = vector.broadcast %cst_35 : f32 to vector<8x64xf32>
    %92 = arith.select %87, %90, %91 : vector<8x64xi1>, vector<8x64xf32>
    %93 = arith.addf %85, %92 : vector<8x64xf32>
    %c7_i32_36 = arith.constant 7 : i32
    %94 = vector.broadcast %c7_i32_36 : i32 to vector<8x64xi32>
    %95 = arith.cmpi slt, %34, %94 : vector<8x64xi32>
    %96 = vector.extract_strided_slice %85 {offsets = [0, 1], sizes = [8, 63], strides = [1, 1]} : vector<8x64xf32> to vector<8x63xf32>
    %cst_37 = arith.constant -1.000000e+30 : f32
    %97 = vector.broadcast %cst_37 : f32 to vector<8x1xf32>
    %98 = tpu.concatenate %96, %97 in 1 : vector<8x63xf32>, vector<8x1xf32> -> vector<8x64xf32>
    %cst_38 = arith.constant 0.000000e+00 : f32
    %99 = vector.broadcast %cst_38 : f32 to vector<8x64xf32>
    %100 = arith.select %95, %98, %99 : vector<8x64xi1>, vector<8x64xf32>
    %101 = arith.addf %85, %100 : vector<8x64xf32>
    %c2_i32_39 = arith.constant 2 : i32
    %102 = vector.broadcast %c2_i32_39 : i32 to vector<8x64xi32>
    %103 = arith.cmpi sge, %34, %102 : vector<8x64xi32>
    %cst_40 = arith.constant -1.000000e+30 : f32
    %104 = vector.broadcast %cst_40 : f32 to vector<8x2xf32>
    %105 = vector.extract_strided_slice %93 {offsets = [0, 0], sizes = [8, 62], strides = [1, 1]} : vector<8x64xf32> to vector<8x62xf32>
    %106 = tpu.concatenate %104, %105 in 1 : vector<8x2xf32>, vector<8x62xf32> -> vector<8x64xf32>
    %cst_41 = arith.constant 0.000000e+00 : f32
    %107 = vector.broadcast %cst_41 : f32 to vector<8x64xf32>
    %108 = arith.select %103, %106, %107 : vector<8x64xi1>, vector<8x64xf32>
    %109 = arith.addf %93, %108 : vector<8x64xf32>
    %c6_i32_42 = arith.constant 6 : i32
    %110 = vector.broadcast %c6_i32_42 : i32 to vector<8x64xi32>
    %111 = arith.cmpi slt, %34, %110 : vector<8x64xi32>
    %112 = vector.extract_strided_slice %101 {offsets = [0, 2], sizes = [8, 62], strides = [1, 1]} : vector<8x64xf32> to vector<8x62xf32>
    %cst_43 = arith.constant -1.000000e+30 : f32
    %113 = vector.broadcast %cst_43 : f32 to vector<8x2xf32>
    %114 = tpu.concatenate %112, %113 in 1 : vector<8x62xf32>, vector<8x2xf32> -> vector<8x64xf32>
    %cst_44 = arith.constant 0.000000e+00 : f32
    %115 = vector.broadcast %cst_44 : f32 to vector<8x64xf32>
    %116 = arith.select %111, %114, %115 : vector<8x64xi1>, vector<8x64xf32>
    %117 = arith.addf %101, %116 : vector<8x64xf32>
    %c4_i32_45 = arith.constant 4 : i32
    %118 = vector.broadcast %c4_i32_45 : i32 to vector<8x64xi32>
    %119 = arith.cmpi sge, %34, %118 : vector<8x64xi32>
    %cst_46 = arith.constant -1.000000e+30 : f32
    %120 = vector.broadcast %cst_46 : f32 to vector<8x4xf32>
    %121 = vector.extract_strided_slice %109 {offsets = [0, 0], sizes = [8, 60], strides = [1, 1]} : vector<8x64xf32> to vector<8x60xf32>
    %122 = tpu.concatenate %120, %121 in 1 : vector<8x4xf32>, vector<8x60xf32> -> vector<8x64xf32>
    %cst_47 = arith.constant 0.000000e+00 : f32
    %123 = vector.broadcast %cst_47 : f32 to vector<8x64xf32>
    %124 = arith.select %119, %122, %123 : vector<8x64xi1>, vector<8x64xf32>
    %125 = arith.addf %109, %124 : vector<8x64xf32>
    %c4_i32_48 = arith.constant 4 : i32
    %126 = vector.broadcast %c4_i32_48 : i32 to vector<8x64xi32>
    %127 = arith.cmpi slt, %34, %126 : vector<8x64xi32>
    %128 = vector.extract_strided_slice %117 {offsets = [0, 4], sizes = [8, 60], strides = [1, 1]} : vector<8x64xf32> to vector<8x60xf32>
    %cst_49 = arith.constant -1.000000e+30 : f32
    %129 = vector.broadcast %cst_49 : f32 to vector<8x4xf32>
    %130 = tpu.concatenate %128, %129 in 1 : vector<8x60xf32>, vector<8x4xf32> -> vector<8x64xf32>
    %cst_50 = arith.constant 0.000000e+00 : f32
    %131 = vector.broadcast %cst_50 : f32 to vector<8x64xf32>
    %132 = arith.select %127, %130, %131 : vector<8x64xi1>, vector<8x64xf32>
    %133 = arith.addf %117, %132 : vector<8x64xf32>
    %134 = arith.addf %125, %133 : vector<8x64xf32>
    %135 = arith.subf %134, %85 : vector<8x64xf32>
    %136 = tpu.reciprocal %135 : vector<8x64xf32> -> vector<8x64xf32>
    %137 = arith.mulf %85, %136 : vector<8x64xf32>
    %c0_51 = arith.constant 0 : index
    %c0_52 = arith.constant 0 : index
    %138 = vector.load %arg8[%c0_51, %c0_52] : memref<64x2048xbf16, #tpu.memory_space<vmem>>, vector<64x2048xbf16>
    %139 = arith.truncf %137 : vector<8x64xf32> to vector<8x64xbf16>
    %140 = arith.extf %139 : vector<8x64xbf16> to vector<8x64xf32>
    %141 = arith.subf %137, %140 : vector<8x64xf32>
    %142 = arith.truncf %141 : vector<8x64xf32> to vector<8x64xbf16>
    %cst_53 = arith.constant dense<0.000000e+00> : vector<8x2048xf32>
    %143 = tpu.matmul %139, %138, %cst_53 {dimension_numbers = #tpu.dot_dimension_numbers<[1], [0], [0], [1], [0, 0, 1, 1], [], []>} : vector<8x64xbf16>, vector<64x2048xbf16>, vector<8x2048xf32> -> vector<8x2048xf32>
    %cst_54 = arith.constant dense<0.000000e+00> : vector<8x2048xf32>
    %144 = tpu.matmul %142, %138, %cst_54 {dimension_numbers = #tpu.dot_dimension_numbers<[1], [0], [0], [1], [0, 0, 1, 1], [], []>} : vector<8x64xbf16>, vector<64x2048xbf16>, vector<8x2048xf32> -> vector<8x2048xf32>
    %145 = arith.addf %143, %144 : vector<8x2048xf32>
    %c0_55 = arith.constant 0 : index
    %c0_56 = arith.constant 0 : index
    %146 = vector.load %arg9[%c0_55, %c0_56] : memref<32x2048xbf16, #tpu.memory_space<vmem>>, vector<32x2048xbf16>
    %147 = arith.truncf %5 : vector<8x32xf32> to vector<8x32xbf16>
    %148 = arith.extf %147 : vector<8x32xbf16> to vector<8x32xf32>
    %149 = arith.subf %5, %148 : vector<8x32xf32>
    %150 = arith.truncf %149 : vector<8x32xf32> to vector<8x32xbf16>
    %cst_57 = arith.constant dense<0.000000e+00> : vector<8x2048xf32>
    %151 = tpu.matmul %147, %146, %cst_57 {dimension_numbers = #tpu.dot_dimension_numbers<[1], [0], [0], [1], [0, 0, 1, 1], [], []>} : vector<8x32xbf16>, vector<32x2048xbf16>, vector<8x2048xf32> -> vector<8x2048xf32>
    %cst_58 = arith.constant dense<0.000000e+00> : vector<8x2048xf32>
    %152 = tpu.matmul %150, %146, %cst_58 {dimension_numbers = #tpu.dot_dimension_numbers<[1], [0], [0], [1], [0, 0, 1, 1], [], []>} : vector<8x32xbf16>, vector<32x2048xbf16>, vector<8x2048xf32> -> vector<8x2048xf32>
    %153 = arith.addf %151, %152 : vector<8x2048xf32>
    %154 = arith.mulf %145, %153 : vector<8x2048xf32>
    %c0_59 = arith.constant 0 : index
    %c0_60 = arith.constant 0 : index
    %155 = vector.load %arg10[%c0_59, %c0_60] : memref<8x2048xf32, #tpu.memory_space<vmem>>, vector<8x2048xf32>
    tpu.vector_store %arg10[%c0_59, %c0_60], %154 {strides = array<i32>} : memref<8x2048xf32, #tpu.memory_space<vmem>>, vector<8x2048xf32>,
    return
  }
  func.func @transform_0(%arg0: i32) -> (i32, i32) {
    %c0_i32 = arith.constant 0 : i32
    %c0_i32_0 = arith.constant 0 : i32
    return %arg0, %c0_i32 : i32, i32
  }
  func.func @transform_1(%arg0: i32) -> (i32, i32) {
    %c0_i32 = arith.constant 0 : i32
    %c0_i32_0 = arith.constant 0 : i32
    %c0_i32_1 = arith.constant 0 : i32
    return %c0_i32, %c0_i32_0 : i32, i32
  }
  func.func @transform_2(%arg0: i32) -> (i32, i32) {
    %c0_i32 = arith.constant 0 : i32
    %c0_i32_0 = arith.constant 0 : i32
    %c0_i32_1 = arith.constant 0 : i32
    return %c0_i32, %c0_i32_0 : i32, i32
  }
  func.func @transform_3(%arg0: i32) -> (i32, i32) {
    %c0_i32 = arith.constant 0 : i32
    %c0_i32_0 = arith.constant 0 : i32
    %c0_i32_1 = arith.constant 0 : i32
    return %c0_i32, %c0_i32_0 : i32, i32
  }
  func.func @transform_4(%arg0: i32) -> (i32, i32) {
    %c0_i32 = arith.constant 0 : i32
    %c0_i32_0 = arith.constant 0 : i32
    %c0_i32_1 = arith.constant 0 : i32
    return %c0_i32, %c0_i32_0 : i32, i32
  }
  func.func @transform_5(%arg0: i32) -> (i32, i32) {
    %c0_i32 = arith.constant 0 : i32
    %c0_i32_0 = arith.constant 0 : i32
    %c0_i32_1 = arith.constant 0 : i32
    return %c0_i32, %c0_i32_0 : i32, i32
  }
  func.func @transform_6(%arg0: i32) -> (i32, i32) {
    %c0_i32 = arith.constant 0 : i32
    %c0_i32_0 = arith.constant 0 : i32
    %c0_i32_1 = arith.constant 0 : i32
    return %c0_i32, %c0_i32_0 : i32, i32
  }
  func.func @transform_7(%arg0: i32) -> (i32, i32) {
    %c0_i32 = arith.constant 0 : i32
    %c0_i32_0 = arith.constant 0 : i32
    %c0_i32_1 = arith.constant 0 : i32
    return %c0_i32, %c0_i32_0 : i32, i32
  }
  func.func @transform_8(%arg0: i32) -> (i32, i32) {
    %c0_i32 = arith.constant 0 : i32
    %c0_i32_0 = arith.constant 0 : i32
    %c0_i32_1 = arith.constant 0 : i32
    return %c0_i32, %c0_i32_0 : i32, i32
  }
  func.func @transform_9(%arg0: i32) -> (i32, i32) {
    %c0_i32 = arith.constant 0 : i32
    %c0_i32_0 = arith.constant 0 : i32
    return %arg0, %c0_i32 : i32, i32
  }
}

</mosaic_0001>

<bundles_post_ra>
// kernel: tpu_custom_call.1
= control target key start
LH: loop header
LB: loop body
LE: loop exit
PB: predicated region body
PF: predicated region fallthrough
CT: control target
= control target key end

     0   :  { %14 = vsyncpa [#allocation3], 0  ;;  %s3514_s0 = inlined_call_operand.vmem [shape: f32[8,32], index: 0, kind: input, shape index: {}]   ;;  %s3515_s1 = inlined_call_operand.vmem [shape: f32[32,32], index: 1, kind: input, shape index: {}]   ;;  %s3516_s2 = inlined_call_operand.vmem [shape: f32[1,32], index: 2, kind: input, shape index: {}]   ;;  %s3517_s3 = inlined_call_operand.vmem [shape: f32[32,128], index: 3, kind: input, shape index: {}]   ;;  %s3518_s4 = inlined_call_operand.vmem [shape: f32[1,128], index: 4, kind: input, shape index: {}]   ;;  %s3519_s5 = inlined_call_operand.vmem [shape: f32[128,64], index: 5, kind: input, shape index: {}]   ;;  %s3520_s6 = inlined_call_operand.vmem [shape: f32[1,64], index: 6, kind: input, shape index: {}]   ;;  %s3521_s7 = inlined_call_operand.hbm [shape: bf16[64,2048], index: 7, kind: input, shape index: {}]   ;;  %s3522_s8 = inlined_call_operand.hbm [shape: bf16[32,2048], index: 8, kind: input, shape index: {}]   ;;  %s3523_s9 = inlined_call_operand.hbm [shape: f32[8,2048], index: 9, kind: output, shape index: {}]  }
   0x1   :  { %15 = vsyncpa [#allocation6], 0 }
   0x2   :  { %16 = vsyncpa [#allocation4], 0  ;;  %s2805_s30 = smov [#allocation2]   ;;  %s2733_s13 = scalar_lea.hbm %s3521_s7, 8192 }
   0x3   :  { %s36_s10 = sshll.u32 %s2805_s30, 4  ;;  %p2734_p0 = scmp.ne.s32.totalorder %s3521_s7, %s2733_s13  ;;  %s37_s10 = int_to_ptr.vmem [resolvable:$true] %s36_s10 }
   0x4   :  { %p2737_p1 = scmp.lt.u32.totalorder %s2733_s13, %s3521_s7 }
   0x6   :  { %p2739_p2 = pnand %p2737_p1, %p2734_p0 }
   0x8   :  { %2742 = shalt.err (!%p2739_p2)
}
   0x9   :  { %s2743_s18 = scalar_lea.vmem %s37_s10, 8192  ;;  %p2748_p4 = scmp.lt.s32.totalorder %s37_s10, %s37_s10 }
   0xa   :  { %p2744_p3 = scmp.ne.s32.totalorder %s37_s10, %s2743_s18  ;;  %p2749_p5 = scmp.lt.s32.totalorder %s2743_s18, %s2743_s18 }
   0xc   :  { %p2750_p6 = por %p2749_p5, %p2748_p4 }
   0xe   :  { %p2751_p7 = pnand %p2750_p6, %p2744_p3 }
  0x10   :  { %2754 = shalt.err (!%p2751_p7)
}
  0x11   :  { %s2806_s19 = smov 1024   ;;  %s2807_s20 = smov 64  }
  0x12   :  { %42 = dma.hbm_to_vmem [thread:$0]  %s3521_s7, 8192, %s37_s10, [#allocation3], %s2806_s19, %s2806_s19, %s2807_s20  }
  0x13   :  { %s2808_s23 = smov [#allocation5]   ;;  %s2755_s27 = scalar_lea.hbm %s3522_s8, 4096 }
  0x14   :  { %s48_s24 = sshll.u32 %s2808_s23, 4  ;;  %p2756_p8 = scmp.ne.s32.totalorder %s3522_s8, %s2755_s27  ;;  %s49_s24 = int_to_ptr.vmem [resolvable:$true] %s48_s24 }
  0x15   :  { %p2759_p9 = scmp.lt.u32.totalorder %s2755_s27, %s3522_s8 }
  0x17   :  { %p2761_p10 = pnand %p2759_p9, %p2756_p8 }
  0x19   :  { %2764 = shalt.err (!%p2761_p10)
}
  0x1a   :  { %s2765_s12 = scalar_lea.vmem %s49_s24, 4096  ;;  %p2770_p12 = scmp.lt.s32.totalorder %s49_s24, %s49_s24 }
  0x1b   :  { %p2766_p11 = scmp.ne.s32.totalorder %s49_s24, %s2765_s12  ;;  %p2771_p13 = scmp.lt.s32.totalorder %s2765_s12, %s2765_s12 }
  0x1d   :  { %p2772_p0 = por %p2771_p13, %p2770_p12 }
  0x1f   :  { %p2773_p1 = pnand %p2772_p0, %p2766_p11 }
  0x21   :  { %2776 = shalt.err (!%p2773_p1)
}
  0x22   :  { %54 = dma.hbm_to_vmem [thread:$0]  %s3522_s8, 4096, %s49_s24, [#allocation6], %s2806_s19, %s2806_s19, %s2807_s20  }
  0x23   :  { %2799 = dma.done.wait [#allocation3], 8192  }
  0x24   :  { %2800 = vsyncadd [#allocation3], 4294959104 }
  0x25   :  { %2801 = dma.done.wait [#allocation6], 4096  }
  0x26   :  { %2802 = vsyncadd [#allocation6], 4294963200  ;;  %v2809_v0 = vmov 0.0|0.0   ;;  %vm2810_vm0 = vmmov 0   ;;  %v2811_v1 = vmov 0.0   ;;  %v63_v2 = vld [vmem:[%s3515_s1] sm:$0xff]  ;;  %v326_v52 = vlaneseq }
  0x27   :  { %2616 = vmatprep.subr.bf16.mxu0 %v2809_v0  ;;  %2567 = vmatprep.mubr.msk.f32.mxu0 %vm2810_vm0, %v2811_v1  ;;  %v64_v3 = vld [vmem:[%s3515_s1 + $0x8] sm:$0xff]  ;;  %v65_v4 = vld [vmem:[%s3515_s1 + $0x10] sm:$0xff]  ;;  %v66_v6 = vld [vmem:[%s3515_s1 + $0x18] sm:$0xff]  ;;  %vm74_vm1 = vcmask 261120   ;;  %s2812_s15 = smov 1   ;;  %vm345_vm2 = vcmask 7168  }
  0x28   :  { %2622 = vmatprep.subr.bf16.mxu1 %v2809_v0  ;;  %2578 = vmatprep.mubr.msk.f32.mxu1 %vm2810_vm0, %v2811_v1  ;;  %v2617_v5 = vpack.c.bf16 %v64_v3, %v63_v2  ;;  %v148_v7 = vld [vmem:[%s3517_s3] sm:$0xff]  ;;  %v149_v8 = vld [vmem:[%s3517_s3 + $0x8] sm:$0xff]  ;;  %v2620_v9 = vpack.c.bf16 %v66_v6, %v65_v4  ;;  %v150_v12 = vld [vmem:[%s3517_s3 + $0x10] sm:$0xff]  ;;  %v327_v53 = vand.u32 127, %v326_v52  ;;  %vm353_vm4 = vcmask 515072   ;;  %s2816_s16 = smov 4  }
  0x29   :  { %v2623_v10 = vpack.c.bf16 %v149_v8, %v148_v7  ;;  %v62_v11 = vld [vmem:[%s3514_s0] sm:$0xff]  ;;  %v151_v13 = vld [vmem:[%s3517_s3 + $0x18] sm:$0xff]  ;;  %v234_v16 = vld [vmem:[%s3519_s5 + $0x8] sm:$0xff]  ;;  %vm362_vm6 = vcmask 15360   ;;  %vm371_vm8 = vcmask 506880   ;;  %s2817_s17 = smov 124  }
  0x2a   :  { %2618 = vmatpush3.bf16.msra.mxu0 %v2617_v5  ;;  %v2626_v14 = vpack.c.bf16 %v151_v13, %v150_v12  ;;  %v233_v15 = vld [vmem:[%s3519_s5] sm:$0xff]  ;;  %v235_v17 = vld [vmem:[%s3519_s5 + $0x10] sm:$0xff]  ;;  %v236_v19 = vld [vmem:[%s3519_s5 + $0x18] sm:$0xff]  ;;  %v3000_v54 = vand.u32 7, %v327_v53  ;;  %vm380_vm10 = vcmask 31744   ;;  %vm389_vm12 = vcmask 490496  }
  0x2b   :  { %2619 = vmatprep.subr.bf16.mxu0 %v2809_v0  ;;  %2624 = vmatpush3.bf16.msra.mxu1 %v2623_v10  ;;  %v2629_v18 = vpack.c.bf16 %v234_v16, %v233_v15  ;;  %v2632_v20 = vpack.c.bf16 %v236_v19, %v235_v17  ;;  %v237_v21 = vld [vmem:[%s3519_s5 + $0x20] sm:$0xff]  ;;  %v238_v22 = vld [vmem:[%s3519_s5 + $0x28] sm:$0xff]  ;;  %v239_v24 = vld [vmem:[%s3519_s5 + $0x30] sm:$0xff]  ;;  %vm830_vm14 = vcmask 523264   ;;  %s2819_s18 = smov [#allocation7]  }
  0x2c   :  { %2625 = vmatprep.subr.bf16.mxu1 %v2809_v0  ;;  %v2635_v23 = vpack.c.bf16 %v238_v22, %v237_v21  ;;  %v240_v25 = vld [vmem:[%s3519_s5 + $0x38] sm:$0xff]  ;;  %v241_v27 = vld [vmem:[%s3519_s5 + $0x40] sm:$0xff]  ;;  %v242_v28 = vld [vmem:[%s3519_s5 + $0x48] sm:$0xff]  ;;  %vm340_vm3 = vcmp.ge.s32.totalorder %v3000_v54, 1  ;;  %vm349_vm5 = vcmp.lt.s32.totalorder %v3000_v54, 7  ;;  %vm357_vm7 = vcmp.ge.s32.totalorder %v3000_v54, 2 }
  0x2d   :  { %v2638_v26 = vpack.c.bf16 %v240_v25, %v239_v24  ;;  %v2641_v29 = vpack.c.bf16 %v242_v28, %v241_v27  ;;  %v243_v30 = vld [vmem:[%s3519_s5 + $0x50] sm:$0xff]  ;;  %v244_v31 = vld [vmem:[%s3519_s5 + $0x58] sm:$0xff]  ;;  %v245_v33 = vld [vmem:[%s3519_s5 + $0x60] sm:$0xff]  ;;  %vm366_vm9 = vcmp.lt.s32.totalorder %v3000_v54, 6  ;;  %vm375_vm11 = vcmp.ge.s32.totalorder %v3000_v54, 4  ;;  %s2389_s19 = sshll.u32 %s2819_s18, 4  ;;  %s2390_s19 = int_to_ptr.vmem [resolvable:$true] %s2389_s19 }
  0x2e   :  { %2621 = vmatpush3.bf16.msra.mxu0 %v2620_v9  ;;  %v2644_v32 = vpack.c.bf16 %v244_v31, %v243_v30  ;;  %v246_v34 = vld [vmem:[%s3519_s5 + $0x68] sm:$0xff]  ;;  %v2399_v36 = vld [vmem:[%s3516_s2] ss:$0 sm:$0xff]  ;;  %v247_v40 = vld [vmem:[%s3519_s5 + $0x70] sm:$0xff]  ;;  %vm384_vm13 = vcmp.lt.s32.totalorder %v3000_v54, 4  ;;  %s2777_s20 = scalar_lea.vmem %s2390_s19, 2048  ;;  %p2782_p3 = scmp.lt.s32.totalorder %s2390_s19, %s2390_s19 }
  0x2f   :  { %2628 = vmatprep.subr.bf16.mxu0 %v2809_v0  ;;  %2627 = vmatpush3.bf16.msra.mxu1 %v2626_v14  ;;  %v2647_v35 = vpack.c.bf16 %v246_v34, %v245_v33  ;;  %v248_v41 = vld [vmem:[%s3519_s5 + $0x78] sm:$0xff]  ;;  %v2401_v43 = vld [vmem:[%s3518_s4] ss:$0 sm:$0xff]  ;;  %s2813_s5 = smov 127   ;;  %s2814_s4 = smov 2   ;;  %v472_v54 = vld [vmem:[#allocation2 + $0xf0] sm:$0xff] }
  0x30   :  { %v2650_v42 = vpack.c.bf16 %v248_v41, %v247_v40  ;;  %v2403_v48 = vld [vmem:[%s3520_s6] ss:$0 sm:$0xff]  ;;  %s2815_s6 = smov 126   ;;  %p2778_p2 = scmp.ne.s32.totalorder %s2390_s19, %s2777_s20 }
  0x31   :  { %2568 = vmatmul.mubr.msk.f32.vlgmr.msra.gmra.mrb[0].mxu0 %vm74_vm1, %v62_v11  ;;  %v442_v31 = vld [vmem:[#allocation2] sm:$0xff]  ;;  %p2783_p4 = scmp.lt.s32.totalorder %s2777_s20, %s2777_s20 }
  0x32   :  { %2613 = vmatprep.mubr.msk.f32.mxu0 %vm2810_vm0, %v2811_v1  ;;  %2630 = vmatpush3.bf16.msra.mxu0 %v2629_v18  ;;  %v474_v52 = vld [vmem:[#allocation2 + $0x100] sm:$0xff] }
  0x33   :  { %2631 = vmatprep.subr.bf16.mxu0 %v2809_v0  ;;  %v482_v53 = vld [vmem:[#allocation2 + $0x140] sm:$0xff]  ;;  %p2784_p5 = por %p2783_p4, %p2782_p3 }
  0x35   :  { %p2785_p6 = pnand %p2784_p5, %p2778_p2 }
  0x36   :  { %2633 = vmatpush3.bf16.msra.mxu0 %v2632_v20 }
  0x37   :  { %2634 = vmatprep.subr.bf16.mxu0 %v2809_v0 }
  0x3a   :  { %2636 = vmatpush3.bf16.msra.mxu0 %v2635_v23 }
  0x3b   :  { %2637 = vmatprep.subr.bf16.mxu0 %v2809_v0 }
  0x3e   :  { %2639 = vmatpush3.bf16.msra.mxu0 %v2638_v26 }
  0x3f   :  { %2640 = vmatprep.subr.bf16.mxu0 %v2809_v0 }
  0x42   :  { %2642 = vmatpush3.bf16.msra.mxu0 %v2641_v29 }
  0x43   :  { %2643 = vmatprep.subr.bf16.mxu0 %v2809_v0 }
  0x46   :  { %2645 = vmatpush3.bf16.msra.mxu0 %v2644_v32  ;;  %v450_v32 = vld [vmem:[#allocation2 + $0x40] sm:$0xff] }
  0x47   :  { %2646 = vmatprep.subr.bf16.mxu0 %v2809_v0  ;;  %v3058_v41 = vcombine.low %v442_v31, %v450_v32 }
  0x4a   :  { %2648 = vmatpush3.bf16.msra.mxu0 %v2647_v35  ;;  %v3052_v35 = vcombine.high %v442_v31, %v450_v32  ;;  %v464_v31 = vld [vmem:[#allocation2 + $0xb0] sm:$0xff] }
  0x4b   :  { %2649 = vmatprep.subr.bf16.mxu0 %v2809_v0 }
  0x4c   :  { %834 = vmatprep.subr.bf16.mxu1 %v3052_v35 }
  0x4e   :  { %2651 = vmatpush3.bf16.msra.mxu0 %v2650_v42 }
 0x104   :  { %v144_v37 = vpop.f32.mrb[0].mxu0 }
 0x105   :  { %v2982_v38 = vadd.f32 %v2399_v36, %v144_v37  ;;  %v2569_v39 = vpop.f32.mrb[1].mxu0  ;;  %v446_v36 = vld [vmem:[#allocation2 + $0x20] sm:$0xff] }
 0x106   :  { %v454_v37 = vld [vmem:[#allocation2 + $0x60] sm:$0xff] }
 0x107   :  { %2579 = vmatmul.mubr.msk.f32.vlgmr.msra.gmra.mrb[0].mxu1 %vm74_vm1, %v2982_v38  ;;  %v3060_v42 = vcombine.low %v446_v36, %v454_v37 }
 0x108   :  { %835 = vmatpush1.bf16.msra.mxu1 %v3058_v41 }
 0x1da   :  { %v228_v44 = vpop.f32.mrb[0].mxu1 }
 0x1db   :  { %v229_v45 = vadd.f32 %v2401_v43, %v228_v44  ;;  %v2580_v46 = vpop.f32.mrb[1].mxu1  ;;  %v3063_v43 = vcombine.high %v446_v36, %v454_v37  ;;  %v458_v44 = vld [vmem:[#allocation2 + $0x80] sm:$0xff]  ;;  %v3137_v36 = vcombine.high %v464_v31, %v472_v54  ;;  %v475_v37 = vld [vmem:[#allocation2 + $0x108] sm:$0xff] }
 0x1dc   :  { %v462_v46 = vld [vmem:[#allocation2 + $0xa0] sm:$0xff] }
 0x1dd   :  { %v232_v47 = vmax.f32 %v229_v45, 0.0  ;;  %v466_v45 = vld [vmem:[#allocation2 + $0xc0] sm:$0xff]  ;;  %998 = vmatprep.subr.bf16.mxu0 %v3063_v43 }
 0x1df   :  { %2614 = vmatmul.mubr.f32.vlgmr.msra.gmra.mrb[2].mxu0 %v232_v47  ;;  %v3071_v47 = vcombine.high %v458_v44, %v466_v45 }
 0x1e0   :  { %999 = vmatpush1.bf16.msra.mxu0 %v3060_v42 }
 0x1e1   :  { %836 = vmatprep.subr.bf16.mxu1 %v3071_v47 }
 0x2b2   :  { %v322_v49 = vpop.f32.mrb[2].mxu0 }
 0x2b3   :  { %v323_v50 = vadd.f32 %v2403_v48, %v322_v49  ;;  %v2615_v51 = vpop.f32.mrb[3].mxu0  ;;  %v470_v48 = vld [vmem:[#allocation2 + $0xe0] sm:$0xff]  ;;  %v3074_v49 = vcombine.low %v458_v44, %v466_v45  ;;  %v3147_v45 = vcombine.low %v464_v31, %v472_v54 }
 0x2b4   :  { %v3078_v51 = vcombine.high %v462_v46, %v470_v48 }
 0x2b5   :  { %342 = vrot.lane.b32.xlu0 %v323_v50, %s2812_s15  ;;  %837 = vmatpush1.bf16.msra.mxu1 %v3074_v49 }
 0x2b6   :  { %1000 = vmatprep.subr.bf16.mxu0 %v3078_v51 }
 0x2b9   :  { %350 = vrot.lane.b32.xlu0 %v323_v50, %s2813_s5 }
 0x327   :  { %v343_v55 = vpop.permute.xlu0 %342 }
 0x328   :  { %v346_v56 = vsel %vm345_vm2, -1e+30, %v343_v55  ;;  %v478_v55 = vld [vmem:[#allocation2 + $0x120] sm:$0xff] }
 0x329   :  { %v347_v57 = vsel %vm340_vm3, %v346_v56, -1e+30  ;;  %v3083_v56 = vcombine.high %v474_v52, %v482_v53 }
 0x32a   :  { %v348_v58 = vmax.f32 %v323_v50, %v347_v57  ;;  %v486_v57 = vld [vmem:[#allocation2 + $0x160] sm:$0xff] }
 0x32b   :  { %v351_v59 = vpop.permute.xlu0 %350  ;;  %838 = vmatprep.subr.bf16.mxu1 %v3083_v56 }
 0x32c   :  { %v354_v60 = vsel %vm353_vm4, %v351_v59, -1e+30  ;;  %359 = vrot.lane.b32.xlu1 %v348_v58, %s2814_s4  ;;  %v3088_v59 = vcombine.low %v478_v55, %v486_v57 }
 0x32d   :  { %v355_v61 = vsel %vm349_vm5, %v354_v60, -1e+30  ;;  %v3090_v60 = vcombine.high %v478_v55, %v486_v57  ;;  %v496_v55 = vld [vmem:[#allocation2 + $0x1b0] sm:$0xff] }
 0x32e   :  { %v356_v62 = vmax.f32 %v323_v50, %v355_v61  ;;  %v490_v61 = vld [vmem:[#allocation2 + $0x180] sm:$0xff]  ;;  %v504_v57 = vld [vmem:[#allocation2 + $0x1f0] sm:$0xff] }
 0x330   :  { %368 = vrot.lane.b32.xlu1 %v356_v62, %s2815_s6 }
 0x39e   :  { %v360_v63 = vpop.permute.xlu1 %359 }
 0x39f   :  { %v363_v0 = vsel %vm362_vm6, -1e+30, %v360_v63  ;;  %v494_v63 = vld [vmem:[#allocation2 + $0x1a0] sm:$0xff] }
 0x3a0   :  { %v364_v1 = vsel %vm357_vm7, %v363_v0, -1e+30 }
 0x3a1   :  { %v365_v2 = vmax.f32 %v348_v58, %v364_v1  ;;  %v3086_v58 = vcombine.low %v474_v52, %v482_v53  ;;  %v502_v1 = vld [vmem:[#allocation2 + $0x1e0] sm:$0xff]  ;;  %v491_v52 = vld [vmem:[#allocation2 + $0x188] sm:$0xff] }
 0x3a2   :  { %v369_v3 = vpop.permute.xlu1 %368  ;;  %v499_v53 = vld [vmem:[#allocation2 + $0x1c8] sm:$0xff] }
 0x3a3   :  { %v372_v4 = vsel %vm371_vm8, %v369_v3, -1e+30  ;;  %377 = vrot.lane.b32.xlu0 %v365_v2, %s2816_s16  ;;  %839 = vmatpush1.bf16.msra.mxu1 %v3086_v58  ;;  %v3100_v3 = vcombine.low %v494_v63, %v502_v1 }
 0x3a4   :  { %v373_v5 = vsel %vm366_vm9, %v372_v4, -1e+30  ;;  %v3102_v4 = vcombine.high %v494_v63, %v502_v1  ;;  %v3165_v63 = vcombine.high %v491_v52, %v499_v53  ;;  %v3167_v1 = vcombine.high %v496_v55, %v504_v57 }
 0x3a5   :  { %v374_v6 = vmax.f32 %v356_v62, %v373_v5  ;;  %v498_v62 = vld [vmem:[#allocation2 + $0x1c0] sm:$0xff]  ;;  %v443_v5 = vld [vmem:[#allocation2 + $0x8] sm:$0xff] }
 0x3a6   :  { %v3095_v0 = vcombine.high %v490_v61, %v498_v62 }
 0x3a7   :  { %386 = vrot.lane.b32.xlu1 %v374_v6, %s2817_s17 }
 0x3a8   :  { %840 = vmatprep.subr.bf16.mxu1 %v3095_v0 }
 0x415   :  { %v378_v7 = vpop.permute.xlu0 %377 }
 0x416   :  { %v381_v8 = vsel %vm380_vm10, -1e+30, %v378_v7  ;;  %v448_v7 = vld [vmem:[#allocation2 + $0x30] sm:$0xff] }
 0x417   :  { %v382_v9 = vsel %vm375_vm11, %v381_v8, -1e+30 }
 0x418   :  { %v383_v13 = vmax.f32 %v365_v2, %v382_v9  ;;  %v3098_v2 = vcombine.low %v490_v61, %v498_v62  ;;  %v456_v9 = vld [vmem:[#allocation2 + $0x70] sm:$0xff] }
 0x419   :  { %v387_v10 = vpop.permute.xlu1 %386 }
 0x41a   :  { %v390_v11 = vsel %vm389_vm12, %v387_v10, -1e+30  ;;  %841 = vmatpush1.bf16.msra.mxu1 %v3098_v2 }
 0x41b   :  { %v391_v12 = vsel %vm384_vm13, %v390_v11, -1e+30  ;;  %v3112_v11 = vcombine.low %v448_v7, %v456_v9 }
 0x41c   :  { %v392_v14 = vmax.f32 %v374_v6, %v391_v12  ;;  %v451_v6 = vld [vmem:[#allocation2 + $0x48] sm:$0xff]  ;;  %v3114_v12 = vcombine.high %v448_v7, %v456_v9  ;;  %v3171_v7 = vcombine.low %v491_v52, %v499_v53  ;;  %v3173_v9 = vcombine.low %v496_v55, %v504_v57  ;;  %v485_v52 = vld [vmem:[#allocation2 + $0x158] sm:$0xff] }
 0x41d   :  { %v3107_v8 = vcombine.high %v443_v5, %v451_v6  ;;  %v3110_v10 = vcombine.low %v443_v5, %v451_v6  ;;  %v444_v5 = vld [vmem:[#allocation2 + $0x10] sm:$0xff]  ;;  %v493_v55 = vld [vmem:[#allocation2 + $0x198] sm:$0xff] }
 0x41e   :  { %v393_v15 = vmax.f32 %v383_v13, %v392_v14  ;;  %v2818_v13 = vmov 0   ;;  %v452_v6 = vld [vmem:[#allocation2 + $0x50] sm:$0xff]  ;;  %v501_v57 = vld [vmem:[#allocation2 + $0x1d8] sm:$0xff] }
 0x41f   :  { %866 = vmatprep.mubr.bf16.mxu1 %v2818_v13  ;;  %875 = vmatprep.subr.bf16.mxu1 %v3107_v8 }
 0x420   :  { %v394_v16 = vsub.f32 %v323_v50, %v393_v15  ;;  %v3076_v50 = vcombine.low %v462_v46, %v470_v48  ;;  %1030 = vmatprep.mubr.bf16.mxu0 %v2818_v13 }
 0x422   :  { %v395_v17 = vmul.f32 1.442695, %v394_v16  ;;  %1001 = vmatpush1.bf16.msra.mxu0 %v3076_v50 }
 0x423   :  { %1002 = vmatprep.subr.bf16.mxu0 %v3090_v60 }
 0x424   :  { %2729 = vpow2.f32 %v395_v17 }
 0x426   :  { %1003 = vmatpush1.bf16.msra.mxu0 %v3088_v59 }
 0x427   :  { %1004 = vmatprep.subr.bf16.mxu0 %v3102_v4 }
 0x42a   :  { %1005 = vmatpush1.bf16.msra.mxu0 %v3100_v3 }
 0x42b   :  { %1080 = vmatprep.subr.bf16.mxu0 %v3114_v12 }
 0x42e   :  { %v3030_v18 = vpop.eup %2729 }
 0x42f   :  { %404 = vrot.lane.b32.xlu1 %v3030_v18, %s2813_s5  ;;  %398 = vrot.lane.b32.xlu0 %v3030_v18, %s2812_s15 }
 0x4a1   :  { %v405_v19 = vpop.permute.xlu1 %404  ;;  %v399_v20 = vpop.permute.xlu0 %398 }
 0x4a2   :  { %v407_v21 = vsel %vm353_vm4, %v405_v19, -1e+30  ;;  %v401_v22 = vsel %vm345_vm2, -1e+30, %v399_v20 }
 0x4a3   :  { %v408_v23 = vsel %vm349_vm5, %v407_v21, 0.0  ;;  %v402_v24 = vsel %vm340_vm3, %v401_v22, 0.0 }
 0x4a4   :  { %v409_v25 = vadd.f32 %v3030_v18, %v408_v23  ;;  %v403_v26 = vadd.f32 %v3030_v18, %v402_v24 }
 0x4a6   :  { %418 = vrot.lane.b32.xlu1 %v409_v25, %s2815_s6  ;;  %411 = vrot.lane.b32.xlu0 %v403_v26, %s2814_s4 }
 0x518   :  { %v419_v27 = vpop.permute.xlu1 %418  ;;  %v412_v28 = vpop.permute.xlu0 %411 }
 0x519   :  { %v421_v29 = vsel %vm371_vm8, %v419_v27, -1e+30  ;;  %v414_v30 = vsel %vm362_vm6, -1e+30, %v412_v28 }
 0x51a   :  { %v422_v33 = vsel %vm366_vm9, %v421_v29, 0.0  ;;  %v415_v34 = vsel %vm357_vm7, %v414_v30, 0.0  ;;  %v459_v29 = vld [vmem:[#allocation2 + $0x88] sm:$0xff] }
 0x51b   :  { %v3054_v39 = vadd.f32 %v422_v33, %v409_v25  ;;  %v3056_v40 = vadd.f32 %v415_v34, %v403_v26  ;;  %v467_v30 = vld [vmem:[#allocation2 + $0xc8] sm:$0xff] }
 0x51c   :  { %v3135_v34 = vcombine.high %v459_v29, %v467_v30  ;;  %v3145_v44 = vcombine.low %v459_v29, %v467_v30  ;;  %v445_v29 = vld [vmem:[#allocation2 + $0x18] sm:$0xff] }
 0x51d   :  { %432 = vrot.lane.b32.xlu1 %v3054_v39, %s2817_s17  ;;  %425 = vrot.lane.b32.xlu0 %v3056_v40, %s2816_s16  ;;  %v453_v30 = vld [vmem:[#allocation2 + $0x58] sm:$0xff] }
 0x51e   :  { %v3185_v54 = vcombine.high %v445_v29, %v453_v30 }
 0x58f   :  { %v433_v14 = vpop.permute.xlu1 %432  ;;  %v426_v15 = vpop.permute.xlu0 %425 }
 0x590   :  { %v435_v16 = vsel %vm389_vm12, %v433_v14, -1e+30  ;;  %v428_v17 = vsel %vm380_vm10, -1e+30, %v426_v15  ;;  %v2409_v14 = vcombine.high %v444_v5, %v452_v6  ;;  %v460_v15 = vld [vmem:[#allocation2 + $0x90] sm:$0xff] }
 0x591   :  { %v436_v19 = vsel %vm384_vm13, %v435_v16, 0.0  ;;  %v429_v20 = vsel %vm375_vm11, %v428_v17, 0.0  ;;  %v468_v16 = vld [vmem:[#allocation2 + $0xd0] sm:$0xff]  ;;  %v2408_v17 = vcombine.low %v444_v5, %v452_v6  ;;  %v455_v6 = vld [vmem:[#allocation2 + $0x68] sm:$0xff] }
 0x592   :  { %v437_v21 = vadd.f32 %v436_v19, %v3054_v39  ;;  %v430_v22 = vadd.f32 %v429_v20, %v3056_v40  ;;  %v483_v39 = vld [vmem:[#allocation2 + $0x148] sm:$0xff]  ;;  %v480_v40 = vld [vmem:[#allocation2 + $0x130] sm:$0xff]  ;;  %v2425_v19 = vcombine.high %v460_v15, %v468_v16 }
 0x593   :  { %v3151_v46 = vcombine.high %v475_v37, %v483_v39  ;;  %v3159_v61 = vcombine.low %v475_v37, %v483_v39  ;;  %v476_v20 = vld [vmem:[#allocation2 + $0x110] sm:$0xff]  ;;  %v469_v37 = vld [vmem:[#allocation2 + $0xd8] sm:$0xff]  ;;  %v3187_v39 = vcombine.low %v445_v29, %v453_v30  ;;  %v1509_v30 = vld [vmem:[#allocation5 + $0x80] sm:$0xff] }
 0x594   :  { %v438_v23 = vadd.f32 %v437_v21, %v430_v22  ;;  %v484_v21 = vld [vmem:[#allocation2 + $0x150] sm:$0xff]  ;;  %v2424_v22 = vcombine.low %v460_v15, %v468_v16  ;;  %v463_v15 = vld [vmem:[#allocation2 + $0xa8] sm:$0xff]  ;;  %v473_v29 = vld [vmem:[#allocation2 + $0xf8] sm:$0xff] }
 0x595   :  { %v471_v16 = vld [vmem:[#allocation2 + $0xe8] sm:$0xff] }
 0x596   :  { %v439_v24 = vsub.f32 %v438_v23, %v3030_v18  ;;  %v2441_v23 = vcombine.high %v476_v20, %v484_v21 }
 0x598   :  { %2731 = vrcp.f32 %v439_v24  ;;  %v492_v24 = vld [vmem:[#allocation2 + $0x190] sm:$0xff] }
 0x5a2   :  { %v2732_v25 = vpop.eup %2731 }
 0x5a3   :  { %v441_v26 = vmul.f32 %v2732_v25, %v3030_v18  ;;  %v488_v18 = vld [vmem:[#allocation2 + $0x170] sm:$0xff] }
 0x5a4   :  { %v3153_v48 = vcombine.high %v480_v40, %v488_v18  ;;  %v3161_v62 = vcombine.low %v480_v40, %v488_v18  ;;  %v500_v25 = vld [vmem:[#allocation2 + $0x1d0] sm:$0xff]  ;;  %v477_v18 = vld [vmem:[#allocation2 + $0x118] sm:$0xff] }
 0x5a5   :  { %v3130_v27 = vpack.c.bf16 %v441_v26, %v441_v26  ;;  %v2456_v31 = vcombine.low %v492_v24, %v500_v25  ;;  %v3209_v5 = vcombine.low %v477_v18, %v485_v52 }
 0x5a7   :  { %v507_v28 = vunpack.c.l.bf16 %v3130_v27 }
 0x5a9   :  { %v508_v32 = vsub.f32 %v441_v26, %v507_v28  ;;  %v2440_v26 = vcombine.low %v476_v20, %v484_v21  ;;  %v2457_v28 = vcombine.high %v492_v24, %v500_v25  ;;  %v503_v20 = vld [vmem:[#allocation2 + $0x1e8] sm:$0xff]  ;;  %v1501_v24 = vld [vmem:[#allocation5 + $0x40] sm:$0xff] }
 0x5ab   :  { %v3133_v33 = vpack.c.bf16 %v508_v32, %v508_v32  ;;  %v461_v32 = vld [vmem:[#allocation2 + $0x98] sm:$0xff] }
 0x5ac   :  { %v3191_v40 = vcombine.high %v461_v32, %v469_v37  ;;  %v3199_v53 = vcombine.low %v461_v32, %v469_v37 }
 0x5ad   :  { %2468 = vmatmul.mubr.msk.bf16.vlgmr.msra.gmra.mrb[4].mxu1 %vm830_vm14, %v3133_v33  ;;  %2472 = vmatmul.mubr.msk.bf16.vlgmr.msra.gmra.mrb[4].mxu0 %vm830_vm14, %v3133_v33 }
 0x5ae   :  { %876 = vmatpush1.bf16.msra.mxu1 %v3110_v10  ;;  %1081 = vmatpush1.bf16.msra.mxu0 %v3112_v11 }
 0x5af   :  { %877 = vmatprep.subr.bf16.mxu1 %v3135_v34  ;;  %1082 = vmatprep.subr.bf16.mxu0 %v3137_v36 }
 0x5b0   :  { %907 = vmatprep.mubr.bf16.mxu1 %v2818_v13  ;;  %1112 = vmatprep.mubr.bf16.mxu0 %v2818_v13 }
 0x5b2   :  { %878 = vmatpush1.bf16.msra.mxu1 %v3145_v44  ;;  %1083 = vmatpush1.bf16.msra.mxu0 %v3147_v45 }
 0x5b3   :  { %879 = vmatprep.subr.bf16.mxu1 %v3151_v46  ;;  %1084 = vmatprep.subr.bf16.mxu0 %v3153_v48 }
 0x5b6   :  { %880 = vmatpush1.bf16.msra.mxu1 %v3159_v61  ;;  %1085 = vmatpush1.bf16.msra.mxu0 %v3161_v62 }
 0x5b7   :  { %881 = vmatprep.subr.bf16.mxu1 %v3165_v63  ;;  %1086 = vmatprep.subr.bf16.mxu0 %v3167_v1 }
 0x5ba   :  { %882 = vmatpush1.bf16.msra.mxu1 %v3171_v7  ;;  %1087 = vmatpush1.bf16.msra.mxu0 %v3173_v9 }
 0x5bb   :  { %916 = vmatprep.subr.bf16.mxu1 %v2409_v14  ;;  %1247 = vmatprep.subr.bf16.mxu0 %v2409_v14  ;;  %v3217_v14 = vcombine.low %v493_v55, %v501_v57 }
 0x5bd   :  { %2469 = vmatmul.mubr.msk.bf16.vlgmr.msra.gmra.mrb[8].mxu1 %vm830_vm14, %v3133_v33  ;;  %2474 = vmatmul.mubr.msk.bf16.vlgmr.msra.gmra.mrb[8].mxu0 %vm830_vm14, %v3133_v33 }
 0x5be   :  { %917 = vmatpush1.bf16.msra.mxu1 %v2408_v17  ;;  %1248 = vmatpush1.bf16.msra.mxu0 %v2408_v17  ;;  %v479_v17 = vld [vmem:[#allocation2 + $0x128] sm:$0xff] }
 0x5bf   :  { %918 = vmatprep.subr.bf16.mxu1 %v2425_v19  ;;  %1249 = vmatprep.subr.bf16.mxu0 %v2425_v19  ;;  %v487_v19 = vld [vmem:[#allocation2 + $0x168] sm:$0xff] }
 0x5c0   :  { %948 = vmatprep.mubr.bf16.mxu1 %v2818_v13  ;;  %1279 = vmatprep.mubr.bf16.mxu0 %v2818_v13  ;;  %v3247_v21 = vcombine.low %v479_v17, %v487_v19 }
 0x5c2   :  { %919 = vmatpush1.bf16.msra.mxu1 %v2424_v22  ;;  %1250 = vmatpush1.bf16.msra.mxu0 %v2424_v22  ;;  %v457_v22 = vld [vmem:[#allocation2 + $0x78] sm:$0xff] }
 0x5c3   :  { %920 = vmatprep.subr.bf16.mxu1 %v2441_v23  ;;  %1251 = vmatprep.subr.bf16.mxu0 %v2441_v23  ;;  %v1493_v23 = vld [vmem:[#allocation5] sm:$0xff] }
 0x5c4   :  { %v3271_v32 = vcombine.low %v1493_v23, %v1501_v24 }
 0x5c6   :  { %921 = vmatpush1.bf16.msra.mxu1 %v2440_v26  ;;  %1252 = vmatpush1.bf16.msra.mxu0 %v2440_v26  ;;  %v3265_v26 = vcombine.high %v1493_v23, %v1501_v24 }
 0x5c7   :  { %922 = vmatprep.subr.bf16.mxu1 %v2457_v28  ;;  %1253 = vmatprep.subr.bf16.mxu0 %v2457_v28  ;;  %v465_v28 = vld [vmem:[#allocation2 + $0xb8] sm:$0xff] }
 0x5ca   :  { %923 = vmatpush1.bf16.msra.mxu1 %v2456_v31  ;;  %1254 = vmatpush1.bf16.msra.mxu0 %v2456_v31  ;;  %v1517_v31 = vld [vmem:[#allocation5 + $0xc0] sm:$0xff] }
 0x5cb   :  { %957 = vmatprep.subr.bf16.mxu1 %v3185_v54  ;;  %1329 = vmatprep.subr.bf16.mxu0 %v3063_v43  ;;  %v3203_v43 = vcombine.high %v477_v18, %v485_v52  ;;  %v3278_v18 = vcombine.high %v1509_v30, %v1517_v31  ;;  %v481_v52 = vld [vmem:[#allocation2 + $0x138] sm:$0xff] }
 0x5cd   :  { %2470 = vmatmul.mubr.msk.bf16.vlgmr.msra.gmra.mrb[12].mxu1 %vm830_vm14, %v3133_v33  ;;  %2478 = vmatmul.mubr.msk.bf16.vlgmr.msra.gmra.mrb[12].mxu0 %vm830_vm14, %v3130_v27 }
 0x5ce   :  { %958 = vmatpush1.bf16.msra.mxu1 %v3187_v39  ;;  %1330 = vmatpush1.bf16.msra.mxu0 %v3060_v42  ;;  %v3213_v42 = vcombine.high %v493_v55, %v501_v57  ;;  %v489_v55 = vld [vmem:[#allocation2 + $0x178] sm:$0xff]  ;;  %v1494_v57 = vld [vmem:[#allocation5 + $0x8] sm:$0xff] }
 0x5cf   :  { %959 = vmatprep.subr.bf16.mxu1 %v3191_v40  ;;  %1331 = vmatprep.subr.bf16.mxu0 %v3078_v51  ;;  %v447_v51 = vld [vmem:[#allocation2 + $0x28] sm:$0xff] }
 0x5d0   :  { %989 = vmatprep.mubr.bf16.mxu1 %v2818_v13  ;;  %1361 = vmatprep.mubr.bf16.mxu0 %v2818_v13 }
 0x5d2   :  { %960 = vmatpush1.bf16.msra.mxu1 %v3199_v53  ;;  %1332 = vmatpush1.bf16.msra.mxu0 %v3076_v50  ;;  %v3221_v50 = vcombine.high %v447_v51, %v455_v6 }
 0x5d3   :  { %961 = vmatprep.subr.bf16.mxu1 %v3203_v43  ;;  %1333 = vmatprep.subr.bf16.mxu0 %v3090_v60  ;;  %v3225_v60 = vcombine.low %v447_v51, %v455_v6  ;;  %v1502_v51 = vld [vmem:[#allocation5 + $0x48] sm:$0xff]  ;;  %v3288_v6 = vcombine.low %v1509_v30, %v1517_v31  ;;  %v1503_v30 = vld [vmem:[#allocation5 + $0x50] sm:$0xff] }
 0x5d6   :  { %962 = vmatpush1.bf16.msra.mxu1 %v3209_v5  ;;  %1334 = vmatpush1.bf16.msra.mxu0 %v3088_v59  ;;  %v3229_v59 = vcombine.high %v463_v15, %v471_v16 }
 0x5d7   :  { %963 = vmatprep.subr.bf16.mxu1 %v3213_v42  ;;  %1335 = vmatprep.subr.bf16.mxu0 %v3102_v4  ;;  %v3241_v4 = vcombine.high %v479_v17, %v487_v19  ;;  %v3295_v17 = vcombine.high %v1494_v57, %v1502_v51  ;;  %v497_v19 = vld [vmem:[#allocation2 + $0x1b8] sm:$0xff] }
 0x5da   :  { %964 = vmatpush1.bf16.msra.mxu1 %v3217_v14  ;;  %1336 = vmatpush1.bf16.msra.mxu0 %v3100_v3  ;;  %v3237_v3 = vcombine.low %v463_v15, %v471_v16  ;;  %v3293_v16 = vcombine.high %v481_v52, %v489_v55 }
 0x5db   :  { %1039 = vmatprep.subr.bf16.mxu1 %v3221_v50  ;;  %1411 = vmatprep.subr.bf16.mxu0 %v3114_v12  ;;  %v495_v12 = vld [vmem:[#allocation2 + $0x1a8] sm:$0xff] }
 0x5dc   :  { %v3255_v25 = vcombine.low %v495_v12, %v503_v20 }
 0x5dd   :  { %2471 = vmatmul.mubr.msk.bf16.vlgmr.msra.gmra.mrb[16].mxu1 %vm830_vm14, %v3133_v33  ;;  %2480 = vmatmul.mubr.msk.bf16.vlgmr.msra.gmra.mrb[4].mxu0 %vm830_vm14, %v3130_v27 }
 0x5de   :  { %1040 = vmatpush1.bf16.msra.mxu1 %v3225_v60  ;;  %1412 = vmatpush1.bf16.msra.mxu0 %v3112_v11  ;;  %v3251_v11 = vcombine.high %v495_v12, %v503_v20  ;;  %v505_v12 = vld [vmem:[#allocation2 + $0x1f8] sm:$0xff]  ;;  %v1510_v20 = vld [vmem:[#allocation5 + $0x88] sm:$0xff] }
 0x5df   :  { %1041 = vmatprep.subr.bf16.mxu1 %v3229_v59  ;;  %1413 = vmatprep.subr.bf16.mxu0 %v3137_v36  ;;  %v449_v36 = vld [vmem:[#allocation2 + $0x38] sm:$0xff]  ;;  %v3309_v24 = vcombine.high %v497_v19, %v505_v12  ;;  %v3317_v31 = vcombine.low %v497_v19, %v505_v12 }
 0x5e0   :  { %1071 = vmatprep.mubr.bf16.mxu1 %v2818_v13  ;;  %1443 = vmatprep.mubr.bf16.mxu0 %v2818_v13  ;;  %v1496_v19 = vld [vmem:[#allocation5 + $0x18] sm:$0xff] }
 0x5e1   :  { %v1504_v12 = vld [vmem:[#allocation5 + $0x58] sm:$0xff] }
 0x5e2   :  { %1042 = vmatpush1.bf16.msra.mxu1 %v3237_v3  ;;  %1414 = vmatpush1.bf16.msra.mxu0 %v3147_v45  ;;  %v3259_v45 = vpack.c.bf16 %v2982_v38, %v2982_v38 }
 0x5e3   :  { %1043 = vmatprep.subr.bf16.mxu1 %v3241_v4  ;;  %1415 = vmatprep.subr.bf16.mxu0 %v3153_v48  ;;  %v3263_v48 = vcombine.high %v449_v36, %v457_v22 }
 0x5e4   :  { %v1526_v37 = vunpack.c.l.bf16 %v3259_v45 }
 0x5e6   :  { %1044 = vmatpush1.bf16.msra.mxu1 %v3247_v21  ;;  %1416 = vmatpush1.bf16.msra.mxu0 %v3161_v62  ;;  %v3269_v62 = vcombine.low %v449_v36, %v457_v22  ;;  %v1527_v15 = vsub.f32 %v2982_v38, %v1526_v37  ;;  %v1518_v36 = vld [vmem:[#allocation5 + $0xc8] sm:$0xff]  ;;  %v3301_v38 = vcombine.low %v481_v52, %v489_v55  ;;  %v1511_v55 = vld [vmem:[#allocation5 + $0x90] sm:$0xff] }
 0x5e7   :  { %1045 = vmatprep.subr.bf16.mxu1 %v3251_v11  ;;  %1417 = vmatprep.subr.bf16.mxu0 %v3167_v1  ;;  %v3276_v1 = vcombine.high %v465_v28, %v473_v29  ;;  %v3303_v22 = vcombine.low %v1494_v57, %v1502_v51  ;;  %v3319_v37 = vcombine.low %v1510_v20, %v1518_v36  ;;  %v1519_v57 = vld [vmem:[#allocation5 + $0xd0] sm:$0xff] }
 0x5e8   :  { %v3305_v23 = vpack.c.bf16 %v1527_v15, %v1527_v15  ;;  %v3332_v15 = vcombine.high %v1511_v55, %v1519_v57 }
 0x5ea   :  { %1046 = vmatpush1.bf16.msra.mxu1 %v3255_v25  ;;  %1418 = vmatpush1.bf16.msra.mxu0 %v3173_v9  ;;  %v3286_v9 = vcombine.low %v465_v28, %v473_v29  ;;  %v3311_v28 = vcombine.high %v1510_v20, %v1518_v36  ;;  %v1495_v29 = vld [vmem:[#allocation5 + $0x10] sm:$0xff]  ;;  %v3340_v20 = vcombine.low %v1511_v55, %v1519_v57  ;;  %v1512_v36 = vld [vmem:[#allocation5 + $0x98] sm:$0xff]  ;;  %v1513_v55 = vld [vmem:[#allocation5 + $0xa0] sm:$0xff] }
 0x5eb   :  { %1121 = vmatprep.subr.bf16.mxu1 %v3263_v48  ;;  %1692 = vmatprep.subr.bf16.mxu0 %v3265_v26  ;;  %v3323_v52 = vcombine.high %v1495_v29, %v1503_v30  ;;  %v3328_v51 = vcombine.low %v1495_v29, %v1503_v30  ;;  %v1520_v29 = vld [vmem:[#allocation5 + $0xd8] sm:$0xff]  ;;  %v1505_v30 = vld [vmem:[#allocation5 + $0x60] sm:$0xff] }
 0x5ec   :  { %v1521_v57 = vld [vmem:[#allocation5 + $0xe0] sm:$0xff] }
 0x5ed   :  { %2473 = vmatmul.mubr.msk.bf16.vlgmr.msra.gmra.mrb[20].mxu1 %vm830_vm14, %v3133_v33  ;;  %2482 = vmatmul.mubr.msk.bf16.vlgmr.msra.gmra.mrb[8].mxu0 %vm830_vm14, %v3130_v27 }
 0x5ee   :  { %1122 = vmatpush1.bf16.msra.mxu1 %v3269_v62  ;;  %1693 = vmatpush1.bf16.msra.mxu0 %v3271_v32 }
 0x5ef   :  { %1123 = vmatprep.subr.bf16.mxu1 %v3276_v1  ;;  %1694 = vmatprep.subr.bf16.mxu0 %v3278_v18 }
 0x5f0   :  { %1724 = vmatprep.mubr.bf16.mxu0 %v2818_v13  ;;  %1153 = vmatprep.mubr.bf16.mxu1 %v2818_v13 }
 0x5f2   :  { %1124 = vmatpush1.bf16.msra.mxu1 %v3286_v9  ;;  %1695 = vmatpush1.bf16.msra.mxu0 %v3288_v6 }
 0x5f3   :  { %1125 = vmatprep.subr.bf16.mxu1 %v3293_v16  ;;  %1733 = vmatprep.subr.bf16.mxu0 %v3295_v17 }
 0x5f5   :  { %2516 = vmatmul.mubr.msk.bf16.vlgmr.msra.gmra.mrb[16].mxu0 %vm74_vm1, %v3305_v23 }
 0x5f6   :  { %1126 = vmatpush1.bf16.msra.mxu1 %v3301_v38  ;;  %1734 = vmatpush1.bf16.msra.mxu0 %v3303_v22 }
 0x5f7   :  { %1127 = vmatprep.subr.bf16.mxu1 %v3309_v24  ;;  %1735 = vmatprep.subr.bf16.mxu0 %v3311_v28 }
 0x5f8   :  { %1765 = vmatprep.mubr.bf16.mxu0 %v2818_v13 }
 0x5fa   :  { %1128 = vmatpush1.bf16.msra.mxu1 %v3317_v31  ;;  %1736 = vmatpush1.bf16.msra.mxu0 %v3319_v37 }
 0x5fb   :  { %1165 = vmatprep.subr.bf16.mxu1 %v3052_v35  ;;  %1774 = vmatprep.subr.bf16.mxu0 %v3323_v52  ;;  %v3344_v35 = vcombine.high %v1496_v19, %v1504_v12 }
 0x5fd   :  { %2475 = vmatmul.mubr.msk.bf16.vlgmr.msra.gmra.mrb[24].mxu1 %vm830_vm14, %v3133_v33  ;;  %2517 = vmatmul.mubr.msk.bf16.vlgmr.msra.gmra.mrb[20].mxu0 %vm74_vm1, %v3305_v23  ;;  %v1497_v33 = vld [vmem:[#allocation5 + $0x20] sm:$0xff] }
 0x5fe   :  { %1166 = vmatpush1.bf16.msra.mxu1 %v3058_v41  ;;  %1775 = vmatpush1.bf16.msra.mxu0 %v3328_v51  ;;  %v3350_v41 = vcombine.low %v1496_v19, %v1504_v12  ;;  %v3369_v19 = vcombine.low %v1497_v33, %v1505_v30  ;;  %v1507_v12 = vld [vmem:[#allocation5 + $0x70] sm:$0xff] }
 0x5ff   :  { %1167 = vmatprep.subr.bf16.mxu1 %v3071_v47  ;;  %1776 = vmatprep.subr.bf16.mxu0 %v3332_v15  ;;  %v3354_v47 = vcombine.high %v1512_v36, %v1520_v29 }
 0x600   :  { %1806 = vmatprep.mubr.bf16.mxu0 %v2818_v13  ;;  %1197 = vmatprep.mubr.bf16.mxu1 %v2818_v13 }
 0x602   :  { %1168 = vmatpush1.bf16.msra.mxu1 %v3074_v49  ;;  %1777 = vmatpush1.bf16.msra.mxu0 %v3340_v20  ;;  %v3360_v49 = vcombine.low %v1512_v36, %v1520_v29  ;;  %v1515_v36 = vld [vmem:[#allocation5 + $0xb0] sm:$0xff] }
 0x603   :  { %1169 = vmatprep.subr.bf16.mxu1 %v3083_v56  ;;  %1815 = vmatprep.subr.bf16.mxu0 %v3344_v35  ;;  %v3364_v56 = vcombine.high %v1497_v33, %v1505_v30  ;;  %v1523_v29 = vld [vmem:[#allocation5 + $0xf0] sm:$0xff] }
 0x604   :  { %v3401_v33 = vcombine.low %v1515_v36, %v1523_v29 }
 0x605   :  { %2518 = vmatmul.mubr.msk.bf16.vlgmr.msra.gmra.mrb[24].mxu0 %vm74_vm1, %v3305_v23 }
 0x606   :  { %1170 = vmatpush1.bf16.msra.mxu1 %v3086_v58  ;;  %1816 = vmatpush1.bf16.msra.mxu0 %v3350_v41  ;;  %v3373_v58 = vcombine.high %v1513_v55, %v1521_v57 }
 0x607   :  { %1171 = vmatprep.subr.bf16.mxu1 %v3095_v0  ;;  %1817 = vmatprep.subr.bf16.mxu0 %v3354_v47  ;;  %v1499_v0 = vld [vmem:[#allocation5 + $0x30] sm:$0xff] }
 0x608   :  { %1847 = vmatprep.mubr.bf16.mxu0 %v2818_v13 }
 0x60a   :  { %1172 = vmatpush1.bf16.msra.mxu1 %v3098_v2  ;;  %1818 = vmatpush1.bf16.msra.mxu0 %v3360_v49  ;;  %v3381_v2 = vcombine.low %v1513_v55, %v1521_v57 }
 0x60b   :  { %1206 = vmatprep.subr.bf16.mxu1 %v3107_v8  ;;  %1856 = vmatprep.subr.bf16.mxu0 %v3364_v56  ;;  %v3385_v8 = vcombine.high %v1499_v0, %v1507_v12 }
 0x60d   :  { %2476 = vmatmul.mubr.msk.bf16.vlgmr.msra.gmra.mrb[4].mxu1 %vm830_vm14, %v3130_v27  ;;  %2519 = vmatmul.mubr.msk.bf16.vlgmr.msra.gmra.mrb[28].mxu0 %vm74_vm1, %v3305_v23 }
 0x60e   :  { %1207 = vmatpush1.bf16.msra.mxu1 %v3110_v10  ;;  %1857 = vmatpush1.bf16.msra.mxu0 %v3369_v19  ;;  %v3391_v10 = vcombine.low %v1499_v0, %v1507_v12 }
 0x60f   :  { %1208 = vmatprep.subr.bf16.mxu1 %v3135_v34  ;;  %1858 = vmatprep.subr.bf16.mxu0 %v3373_v58  ;;  %v3395_v34 = vcombine.high %v1515_v36, %v1523_v29 }
 0x610   :  { %1888 = vmatprep.mubr.bf16.mxu0 %v2818_v13  ;;  %1238 = vmatprep.mubr.bf16.mxu1 %v2818_v13 }
 0x612   :  { %1209 = vmatpush1.bf16.msra.mxu1 %v3145_v44  ;;  %1859 = vmatpush1.bf16.msra.mxu0 %v3381_v2  ;;  %v1498_v44 = vld [vmem:[#allocation5 + $0x28] sm:$0xff] }
 0x613   :  { %1210 = vmatprep.subr.bf16.mxu1 %v3151_v46  ;;  %1938 = vmatprep.subr.bf16.mxu0 %v3385_v8  ;;  %v1506_v46 = vld [vmem:[#allocation5 + $0x68] sm:$0xff] }
 0x615   :  { %2520 = vmatmul.mubr.msk.bf16.vlgmr.msra.gmra.mrb[32].mxu0 %vm74_vm1, %v3305_v23 }
 0x616   :  { %1211 = vmatpush1.bf16.msra.mxu1 %v3159_v61  ;;  %1939 = vmatpush1.bf16.msra.mxu0 %v3391_v10  ;;  %v2495_v61 = vcombine.high %v1498_v44, %v1506_v46 }
 0x617   :  { %1212 = vmatprep.subr.bf16.mxu1 %v3165_v63  ;;  %1940 = vmatprep.subr.bf16.mxu0 %v3395_v34  ;;  %v1514_v63 = vld [vmem:[#allocation5 + $0xa8] sm:$0xff] }
 0x618   :  { %1970 = vmatprep.mubr.bf16.mxu0 %v2818_v13 }
 0x61a   :  { %1213 = vmatpush1.bf16.msra.mxu1 %v3171_v7  ;;  %1941 = vmatpush1.bf16.msra.mxu0 %v3401_v33  ;;  %v1522_v7 = vld [vmem:[#allocation5 + $0xe8] sm:$0xff] }
 0x61b   :  { %1288 = vmatprep.subr.bf16.mxu1 %v3185_v54  ;;  %2023 = vmatprep.subr.bf16.mxu0 %v3265_v26  ;;  %v2494_v54 = vcombine.low %v1498_v44, %v1506_v46 }
 0x61d   :  { %2477 = vmatmul.mubr.msk.bf16.vlgmr.msra.gmra.mrb[8].mxu1 %vm830_vm14, %v3130_v27  ;;  %2522 = vmatmul.mubr.msk.bf16.vlgmr.msra.gmra.mrb[36].mxu0 %vm74_vm1, %v3305_v23 }
 0x61e   :  { %1289 = vmatpush1.bf16.msra.mxu1 %v3187_v39  ;;  %2024 = vmatpush1.bf16.msra.mxu0 %v3271_v32  ;;  %v2511_v39 = vcombine.high %v1514_v63, %v1522_v7 }
 0x61f   :  { %1290 = vmatprep.subr.bf16.mxu1 %v3191_v40  ;;  %2025 = vmatprep.subr.bf16.mxu0 %v3278_v18  ;;  %v1500_v40 = vld [vmem:[#allocation5 + $0x38] sm:$0xff] }
 0x620   :  { %2055 = vmatprep.mubr.bf16.mxu0 %v2818_v13  ;;  %1320 = vmatprep.mubr.bf16.mxu1 %v2818_v13 }
 0x622   :  { %1291 = vmatpush1.bf16.msra.mxu1 %v3199_v53  ;;  %2026 = vmatpush1.bf16.msra.mxu0 %v3288_v6  ;;  %v1508_v53 = vld [vmem:[#allocation5 + $0x78] sm:$0xff] }
 0x623   :  { %1292 = vmatprep.subr.bf16.mxu1 %v3203_v43  ;;  %2064 = vmatprep.subr.bf16.mxu0 %v3295_v17  ;;  %v2510_v43 = vcombine.low %v1514_v63, %v1522_v7 }
 0x625   :  { %2524 = vmatmul.mubr.msk.bf16.vlgmr.msra.gmra.mrb[16].mxu0 %vm74_vm1, %v3259_v45 }
 0x626   :  { %1293 = vmatpush1.bf16.msra.mxu1 %v3209_v5  ;;  %2065 = vmatpush1.bf16.msra.mxu0 %v3303_v22  ;;  %v2499_v5 = vcombine.high %v1500_v40, %v1508_v53 }
 0x627   :  { %1294 = vmatprep.subr.bf16.mxu1 %v3213_v42  ;;  %2066 = vmatprep.subr.bf16.mxu0 %v3311_v28  ;;  %v1516_v42 = vld [vmem:[#allocation5 + $0xb8] sm:$0xff] }
 0x628   :  { %2096 = vmatprep.mubr.bf16.mxu0 %v2818_v13 }
 0x62a   :  { %1295 = vmatpush1.bf16.msra.mxu1 %v3217_v14  ;;  %2067 = vmatpush1.bf16.msra.mxu0 %v3319_v37  ;;  %v1524_v14 = vld [vmem:[#allocation5 + $0xf8] sm:$0xff] }
 0x62b   :  { %1370 = vmatprep.subr.bf16.mxu1 %v3221_v50  ;;  %2105 = vmatprep.subr.bf16.mxu0 %v3323_v52  ;;  %v2498_v50 = vcombine.low %v1500_v40, %v1508_v53 }
 0x62d   :  { %2479 = vmatmul.mubr.msk.bf16.vlgmr.msra.gmra.mrb[16].mxu1 %vm830_vm14, %v3130_v27  ;;  %2525 = vmatmul.mubr.msk.bf16.vlgmr.msra.gmra.mrb[20].mxu0 %vm74_vm1, %v3259_v45 }
 0x62e   :  { %1371 = vmatpush1.bf16.msra.mxu1 %v3225_v60  ;;  %2106 = vmatpush1.bf16.msra.mxu0 %v3328_v51  ;;  %v2515_v60 = vcombine.high %v1516_v42, %v1524_v14 }
 0x62f   :  { %1372 = vmatprep.subr.bf16.mxu1 %v3229_v59  ;;  %2107 = vmatprep.subr.bf16.mxu0 %v3332_v15 }
 0x630   :  { %2137 = vmatprep.mubr.bf16.mxu0 %v2818_v13  ;;  %1402 = vmatprep.mubr.bf16.mxu1 %v2818_v13 }
 0x632   :  { %1373 = vmatpush1.bf16.msra.mxu1 %v3237_v3  ;;  %2108 = vmatpush1.bf16.msra.mxu0 %v3340_v20 }
 0x633   :  { %1374 = vmatprep.subr.bf16.mxu1 %v3241_v4  ;;  %2146 = vmatprep.subr.bf16.mxu0 %v3344_v35 }
 0x635   :  { %2526 = vmatmul.mubr.msk.bf16.vlgmr.msra.gmra.mrb[24].mxu0 %vm74_vm1, %v3259_v45 }
 0x636   :  { %1375 = vmatpush1.bf16.msra.mxu1 %v3247_v21  ;;  %2147 = vmatpush1.bf16.msra.mxu0 %v3350_v41 }
 0x637   :  { %1376 = vmatprep.subr.bf16.mxu1 %v3251_v11  ;;  %2148 = vmatprep.subr.bf16.mxu0 %v3354_v47 }
 0x638   :  { %2178 = vmatprep.mubr.bf16.mxu0 %v2818_v13 }
 0x63a   :  { %1377 = vmatpush1.bf16.msra.mxu1 %v3255_v25  ;;  %2149 = vmatpush1.bf16.msra.mxu0 %v3360_v49 }
 0x63b   :  { %1452 = vmatprep.subr.bf16.mxu1 %v3263_v48  ;;  %2187 = vmatprep.subr.bf16.mxu0 %v3364_v56 }
 0x63d   :  { %2481 = vmatmul.mubr.msk.bf16.vlgmr.msra.gmra.mrb[20].mxu1 %vm830_vm14, %v3130_v27  ;;  %2527 = vmatmul.mubr.msk.bf16.vlgmr.msra.gmra.mrb[28].mxu0 %vm74_vm1, %v3259_v45 }
 0x63e   :  { %1453 = vmatpush1.bf16.msra.mxu1 %v3269_v62  ;;  %2188 = vmatpush1.bf16.msra.mxu0 %v3369_v19 }
 0x63f   :  { %1454 = vmatprep.subr.bf16.mxu1 %v3276_v1  ;;  %2189 = vmatprep.subr.bf16.mxu0 %v3373_v58 }
 0x640   :  { %2219 = vmatprep.mubr.bf16.mxu0 %v2818_v13  ;;  %1484 = vmatprep.mubr.bf16.mxu1 %v2818_v13 }
 0x642   :  { %1455 = vmatpush1.bf16.msra.mxu1 %v3286_v9  ;;  %2190 = vmatpush1.bf16.msra.mxu0 %v3381_v2 }
 0x643   :  { %1456 = vmatprep.subr.bf16.mxu1 %v3293_v16  ;;  %2269 = vmatprep.subr.bf16.mxu0 %v3385_v8 }
 0x645   :  { %2528 = vmatmul.mubr.msk.bf16.vlgmr.msra.gmra.mrb[32].mxu0 %vm74_vm1, %v3259_v45 }
 0x646   :  { %1457 = vmatpush1.bf16.msra.mxu1 %v3301_v38  ;;  %2270 = vmatpush1.bf16.msra.mxu0 %v3391_v10 }
 0x647   :  { %1458 = vmatprep.subr.bf16.mxu1 %v3309_v24  ;;  %2271 = vmatprep.subr.bf16.mxu0 %v3395_v34 }
 0x648   :  { %2301 = vmatprep.mubr.bf16.mxu0 %v2818_v13 }
 0x64a   :  { %1459 = vmatpush1.bf16.msra.mxu1 %v3317_v31  ;;  %2272 = vmatpush1.bf16.msra.mxu0 %v3401_v33 }
 0x64b   :  { %1897 = vmatprep.subr.bf16.mxu1 %v2495_v61 }
 0x64d   :  { %2483 = vmatmul.mubr.msk.bf16.vlgmr.msra.gmra.mrb[24].mxu1 %vm830_vm14, %v3130_v27  ;;  %2530 = vmatmul.mubr.msk.bf16.vlgmr.msra.gmra.mrb[36].mxu0 %vm74_vm1, %v3259_v45  ;;  %v2514_v27 = vcombine.low %v1516_v42, %v1524_v14 }
 0x64e   :  { %1898 = vmatpush1.bf16.msra.mxu1 %v2494_v54  ;;  %1929 = vmatprep.mubr.bf16.mxu1 %v2818_v13 }
 0x64f   :  { %1899 = vmatprep.subr.bf16.mxu1 %v2511_v39 }
 0x652   :  { %1900 = vmatpush1.bf16.msra.mxu1 %v2510_v43 }
 0x653   :  { %1979 = vmatprep.subr.bf16.mxu1 %v2499_v5 }
 0x655   :  { %2521 = vmatmul.mubr.msk.bf16.vlgmr.msra.gmra.mrb[28].mxu1 %vm74_vm1, %v3305_v23 }
 0x656   :  { %1980 = vmatpush1.bf16.msra.mxu1 %v2498_v50  ;;  %2011 = vmatprep.mubr.bf16.mxu1 %v2818_v13 }
 0x657   :  { %1981 = vmatprep.subr.bf16.mxu1 %v2515_v60 }
 0x65a   :  { %1982 = vmatpush1.bf16.msra.mxu1 %v2514_v27 }
 0x65b   :  { %2228 = vmatprep.subr.bf16.mxu1 %v2495_v61 }
 0x65d   :  { %2523 = vmatmul.mubr.msk.bf16.vlgmr.msra.gmra.mrb[32].mxu1 %vm74_vm1, %v3305_v23 }
 0x65e   :  { %2229 = vmatpush1.bf16.msra.mxu1 %v2494_v54  ;;  %2260 = vmatprep.mubr.bf16.mxu1 %v2818_v13 }
 0x65f   :  { %2230 = vmatprep.subr.bf16.mxu1 %v2511_v39 }
 0x662   :  { %2231 = vmatpush1.bf16.msra.mxu1 %v2510_v43 }
 0x663   :  { %2310 = vmatprep.subr.bf16.mxu1 %v2499_v5 }
 0x665   :  { %2529 = vmatmul.mubr.msk.bf16.vlgmr.msra.gmra.mrb[28].mxu1 %vm74_vm1, %v3259_v45 }
 0x666   :  { %2311 = vmatpush1.bf16.msra.mxu1 %v2498_v50  ;;  %2342 = vmatprep.mubr.bf16.mxu1 %v2818_v13 }
 0x667   :  { %2312 = vmatprep.subr.bf16.mxu1 %v2515_v60 }
 0x66a   :  { %2313 = vmatpush1.bf16.msra.mxu1 %v2514_v27 }
 0x66d   :  { %2531 = vmatmul.mubr.msk.bf16.vlgmr.msra.gmra.mrb[32].mxu1 %vm74_vm1, %v3259_v45 }
 0x6a0   :  { %v950_v59 = vpop.f32.mrb[12].mxu1  ;;  %v1281_v3 = vpop.f32.mrb[12].mxu0 }
 0x6a1   :  { %v1282_v4 = vadd.f32 %v1281_v3, %v950_v59  ;;  %v952_v21 = vpop.f32.mrb[13].mxu1  ;;  %v1283_v11 = vpop.f32.mrb[13].mxu0 }
 0x6a2   :  { %v1284_v25 = vadd.f32 %v1283_v11, %v952_v21  ;;  %v954_v48 = vpop.f32.mrb[14].mxu1  ;;  %v1285_v26 = vpop.f32.mrb[14].mxu0 }
 0x6a3   :  { %v955_v62 = vpop.f32.mrb[15].mxu1  ;;  %v1286_v32 = vpop.f32.mrb[15].mxu0 }
 0x6b0   :  { %v1363_v1 = vpop.f32.mrb[4].mxu0 }
 0x6b1   :  { %v1365_v18 = vpop.f32.mrb[5].mxu0 }
 0x6b2   :  { %v1367_v9 = vpop.f32.mrb[6].mxu0 }
 0x6b3   :  { %v1368_v6 = vpop.f32.mrb[7].mxu0 }
 0x6c0   :  { %v1445_v13 = vpop.f32.mrb[8].mxu0 }
 0x6c1   :  { %v3499_v16 = vpop.f32.mrb[9].mxu0 }
 0x6c2   :  { %v1449_v17 = vpop.f32.mrb[10].mxu0 }
 0x6c3   :  { %v1450_v38 = vpop.f32.mrb[11].mxu0 }
 0x6e0   :  { %v1199_v45 = vpop.f32.mrb[4].mxu1 }
 0x6e1   :  { %v1201_v22 = vpop.f32.mrb[5].mxu1 }
 0x6e2   :  { %v1203_v23 = vpop.f32.mrb[6].mxu1 }
 0x6e3   :  { %v1204_v24 = vpop.f32.mrb[7].mxu1 }
 0x6f0   :  { %v1240_v28 = vpop.f32.mrb[8].mxu1 }
 0x6f1   :  { %v1242_v31 = vpop.f32.mrb[9].mxu1 }
 0x6f2   :  { %v1244_v37 = vpop.f32.mrb[10].mxu1 }
 0x6f3   :  { %v1245_v52 = vpop.f32.mrb[11].mxu1 }
 0x6f8   :  { %v2057_v51 = vpop.f32.mrb[16].mxu0 }
 0x6f9   :  { %v2351_v15 = vmul.f32 %v2057_v51, %v1199_v45  ;;  %v2059_v20 = vpop.f32.mrb[17].mxu0 }
 0x6fa   :  { %v2352_v35 = vmul.f32 %v2059_v20, %v1201_v22  ;;  %v2061_v41 = vpop.f32.mrb[18].mxu0 }
 0x6fb   :  { %2367 = vst [vmem:[#allocation7] sm:$0xff] %v2351_v15  ;;  %v2062_v47 = vpop.f32.mrb[19].mxu0 }
 0x6fc   :  { %2368 = vst [vmem:[#allocation7 + $0x8] sm:$0xff] %v2352_v35 }
 0x700   :  { %v1322_v30 = vpop.f32.mrb[16].mxu1  ;;  %v2098_v49 = vpop.f32.mrb[20].mxu0 }
 0x701   :  { %v2353_v56 = vmul.f32 %v2098_v49, %v1240_v28  ;;  %v1324_v55 = vpop.f32.mrb[17].mxu1  ;;  %v2100_v57 = vpop.f32.mrb[21].mxu0 }
 0x702   :  { %v2354_v19 = vmul.f32 %v2100_v57, %v1242_v31  ;;  %v1326_v58 = vpop.f32.mrb[18].mxu1  ;;  %v2102_v0 = vpop.f32.mrb[22].mxu0 }
 0x703   :  { %2369 = vst [vmem:[#allocation7 + $0x10] sm:$0xff] %v2353_v56  ;;  %v1327_v12 = vpop.f32.mrb[19].mxu1  ;;  %v2103_v2 = vpop.f32.mrb[23].mxu0 }
 0x704   :  { %2370 = vst [vmem:[#allocation7 + $0x18] sm:$0xff] %v2354_v19 }
 0x708   :  { %v2139_v8 = vpop.f32.mrb[24].mxu0 }
 0x709   :  { %v2355_v36 = vmul.f32 %v2139_v8, %v1282_v4  ;;  %v2141_v29 = vpop.f32.mrb[25].mxu0 }
 0x70a   :  { %v2356_v10 = vmul.f32 %v2141_v29, %v1284_v25  ;;  %v2143_v34 = vpop.f32.mrb[26].mxu0 }
 0x70b   :  { %2371 = vst [vmem:[#allocation7 + $0x20] sm:$0xff] %v2355_v36  ;;  %v2144_v33 = vpop.f32.mrb[27].mxu0 }
 0x70c   :  { %2372 = vst [vmem:[#allocation7 + $0x28] sm:$0xff] %v2356_v10 }
 0x710   :  { %v1404_v44 = vpop.f32.mrb[20].mxu1  ;;  %v2180_v46 = vpop.f32.mrb[28].mxu0 }
 0x711   :  { %v2357_v61 = vmul.f32 %v2180_v46, %v1322_v30  ;;  %v1406_v63 = vpop.f32.mrb[21].mxu1  ;;  %v2182_v7 = vpop.f32.mrb[29].mxu0 }
 0x712   :  { %v2358_v54 = vmul.f32 %v2182_v7, %v1324_v55  ;;  %v1408_v39 = vpop.f32.mrb[22].mxu1  ;;  %v2184_v40 = vpop.f32.mrb[30].mxu0 }
 0x713   :  { %2373 = vst [vmem:[#allocation7 + $0x30] sm:$0xff] %v2357_v61  ;;  %v1409_v53 = vpop.f32.mrb[23].mxu1  ;;  %v2185_v43 = vpop.f32.mrb[31].mxu0 }
 0x714   :  { %2374 = vst [vmem:[#allocation7 + $0x38] sm:$0xff] %v2358_v54 }
 0x718   :  { %v2221_v5 = vpop.f32.mrb[32].mxu0 }
 0x719   :  { %v2359_v42 = vmul.f32 %v2221_v5, %v1363_v1  ;;  %v2223_v14 = vpop.f32.mrb[33].mxu0 }
 0x71a   :  { %v2360_v50 = vmul.f32 %v2223_v14, %v1365_v18  ;;  %v2225_v60 = vpop.f32.mrb[34].mxu0 }
 0x71b   :  { %2375 = vst [vmem:[#allocation7 + $0x40] sm:$0xff] %v2359_v42  ;;  %v2226_v27 = vpop.f32.mrb[35].mxu0 }
 0x71c   :  { %2376 = vst [vmem:[#allocation7 + $0x48] sm:$0xff] %v2360_v50 }
 0x720   :  { %v1486_v59 = vpop.f32.mrb[24].mxu1  ;;  %v2303_v3 = vpop.f32.mrb[36].mxu0 }
 0x721   :  { %v2363_v4 = vmul.f32 %v2303_v3, %v1445_v13  ;;  %v1488_v21 = vpop.f32.mrb[25].mxu1  ;;  %v2305_v11 = vpop.f32.mrb[37].mxu0 }
 0x722   :  { %v2364_v25 = vmul.f32 %v2305_v11, %v3499_v16  ;;  %v1490_v48 = vpop.f32.mrb[26].mxu1  ;;  %v2307_v26 = vpop.f32.mrb[38].mxu0 }
 0x723   :  { %2379 = vst [vmem:[#allocation7 + $0x60] sm:$0xff] %v2363_v4  ;;  %v1491_v62 = vpop.f32.mrb[27].mxu1  ;;  %v2308_v32 = vpop.f32.mrb[39].mxu0 }
 0x724   :  { %2380 = vst [vmem:[#allocation7 + $0x68] sm:$0xff] %v2364_v25 }
 0x738   :  { %v2262_v1 = vpop.f32.mrb[28].mxu1 }
 0x739   :  { %v2361_v9 = vmul.f32 %v2262_v1, %v1404_v44  ;;  %v2264_v18 = vpop.f32.mrb[29].mxu1 }
 0x73a   :  { %v2362_v6 = vmul.f32 %v2264_v18, %v1406_v63  ;;  %v2266_v17 = vpop.f32.mrb[30].mxu1 }
 0x73b   :  { %2377 = vst [vmem:[#allocation7 + $0x50] sm:$0xff] %v2361_v9  ;;  %v2267_v38 = vpop.f32.mrb[31].mxu1 }
 0x73c   :  { %2378 = vst [vmem:[#allocation7 + $0x58] sm:$0xff] %v2362_v6 }
 0x740   :  { %v2344_v13 = vpop.f32.mrb[32].mxu1 }
 0x741   :  { %v2365_v45 = vmul.f32 %v2344_v13, %v1486_v59  ;;  %v2346_v22 = vpop.f32.mrb[33].mxu1 }
 0x742   :  { %v2366_v16 = vmul.f32 %v2346_v22, %v1488_v21  ;;  %v2348_v23 = vpop.f32.mrb[34].mxu1 }
 0x743   :  { %2381 = vst [vmem:[#allocation7 + $0x70] sm:$0xff] %v2365_v45  ;;  %v2349_v24 = vpop.f32.mrb[35].mxu1 }
 0x744   :  { %2382 = vst [vmem:[#allocation7 + $0x78] sm:$0xff] %v2366_v16 }
 0x745   :  { %2788 = shalt.err (!%p2785_p6)
}
 0x746   :  { %s2789_s23 = scalar_lea.hbm %s3523_s9, 2048 }
 0x747   :  { %p2790_p7 = scmp.ne.s32.totalorder %s3523_s9, %s2789_s23  ;;  %p2793_p8 = scmp.lt.u32.totalorder %s2789_s23, %s3523_s9 }
 0x749   :  { %p2795_p9 = pnand %p2793_p8, %p2790_p7 }
 0x74b   :  { %2798 = shalt.err (!%p2795_p9)
}
 0x74c   :  { %2392 = dma.vmem_to_hbm [thread:$0]  %s2390_s19, 2048, %s3523_s9, [#allocation4]  }
 0x74d   :  { %2803 = dma.done.wait [#allocation4], 2048  }
 0x74e   :  { %2804 = vsyncadd [#allocation4], 4294965248 }
 0x74f   :  { %2396 = vsyncpa [#allocation3], 1 }
 0x750   :  { %2397 = vsyncpa [#allocation6], 1 }
 0x751   :  { %2398 = vsyncpa [#allocation4], 1 }

</bundles_post_ra>
